<compile_context>
chip_gen: v7x
topology: tpu7x:2x2x1
jax: 0.10.0
libtpu: 0.0.40
codegen_flags: <defaults>
</compile_context>

<pallas_src>
import functools

import jax
import jax.numpy as jnp
from jax.experimental import pallas as pl
from jax.experimental.pallas import tpu as pltpu

STAGES = 6      # stage_num
HY_CH = 32      # HyPaNet hidden channel (RPCANetHQS passes channel=32)
SUB = 8         # pixels packed per sublane column


# ------------------------------ fused kernel -------------------------------
def _fused_kernel(d_ref, z_ref, w1_ref, b1_ref, w2_ref, b2_ref, w3_ref, b3_ref,
                  t_ref):
    d = d_ref[...]                                     # (8, C) f32
    z = z_ref[...]                                     # (8, C) f32

    # ---- HyPaNet (1x1-conv MLP) on sublane-packed pixels -------------------
    # layer 1: block-diagonal scale (w1 "D" column ⊗ I8); "ones" channel is
    # folded into the bias.
    h = jnp.dot(w1_ref[...], d, preferred_element_type=jnp.float32) + b1_ref[...]
    h = jnp.maximum(h, 0.0)                            # (256, C)
    # layers 2 / 3: Kronecker-expanded 1x1 convs -> dense MXU matmuls.
    h = jnp.dot(w2_ref[...], h.astype(w2_ref.dtype),
                preferred_element_type=jnp.float32) + b2_ref[...]
    h = jnp.maximum(h, 0.0)                            # (256, C)
    y = jnp.dot(w3_ref[...], h.astype(w3_ref.dtype),
                preferred_element_type=jnp.float32) + b3_ref[...]   # (96, C)
    # stable softplus + 1e-6 (matches torch.nn.Softplus up to its linear cutoff)
    y = jnp.maximum(y, 0.0) + jnp.log(1.0 + jnp.exp(-jnp.abs(y))) + 1e-6

    half = y.shape[0] // 2                             # S * 8 rows of mu
    sub = d.shape[0]                                   # 8
    mu = y[:half, :]                                   # (S*8, C)
    inv = 1.0 / (1.0 + mu)                             # hoisted slab divide
    param = jnp.maximum(y[half:, :], 0.0)              # hoisted relu(gama)

    # ---- unrolled stages: LowrankModule + SparseModule (simplified algebra) -
    #   x = D - B = (mu*(D - Z) + T) / (1 + mu)
    #   T = relu(softshrink(x, param)) == max(x - param, 0)   (param >= 0)
    dz = d - z
    t = jnp.zeros_like(d)
    for i in range(half // sub):                       # 6 static stages
        r = i * sub
        x = (mu[r:r + sub, :] * dz + t) * inv[r:r + sub, :]
        t = jnp.maximum(x - param[r:r + sub, :], 0.0)
    t_ref[...] = t


# -------------------------------- wrapper ----------------------------------
def rpcanet_hqs_forward(D, Z, hy_params, *, stage_num=STAGES, tile_pixels=32768,
                        matmul_dtype=jnp.float32):
    """D, Z: (N, 1, H, W) float32 (NCHW, C=1). Returns (D, T) like mode='train'.

    Z plays the role of torch.randn_like(D) in the PyTorch module; it is passed
    explicitly so the forward is deterministic/testable.
    """
    N, C, H, W = D.shape
    assert C == 1
    S = stage_num
    P = N * H * W

    # ---- pack pixels 8-per-sublane-column: (N,1,H,W) -> (8, P/8) -----------
    # Pad only when P is not a multiple of 8*128; otherwise these are pure
    # metadata reshapes (no extra HBM copies of D/Z).
    P_pad = pl.cdiv(P, SUB * 128) * (SUB * 128)
    d_flat = D.reshape(1, P).astype(jnp.float32)
    z_flat = Z.reshape(1, P).astype(jnp.float32)
    if P_pad != P:
        d_flat = jnp.pad(d_flat, ((0, 0), (0, P_pad - P)))
        z_flat = jnp.pad(z_flat, ((0, 0), (0, P_pad - P)))
    cols = P_pad // SUB
    d2 = d_flat.reshape(SUB, cols)
    z2 = z_flat.reshape(SUB, cols)

    # Tile along the lane (pixel-column) axis; tiles are balanced so a ragged
    # last tile does little wasted work (OOB columns are masked on writeback
    # and never mix with valid columns — all row mixing is per-column).
    target_cols = max(128, min(tile_pixels // SUB, cols))
    n_tiles = pl.cdiv(cols, target_cols)
    tile_cols = pl.cdiv(pl.cdiv(cols, n_tiles), 128) * 128
    grid = (pl.cdiv(cols, tile_cols),)

    # ---- HyPaNet weights: fold "ones" channel, drop dead lamd branch, and
    # Kronecker-expand by I8 so the MLP runs block-diagonally on packed pixels.
    w1, b1, w2, b2, w3, b3 = hy_params
    ch = w1.shape[1]
    ch8 = ch * SUB
    eye = jnp.eye(SUB, dtype=jnp.float32)
    w1big = jnp.kron(w1[0].reshape(ch, 1), eye)                         # (8ch, 8)
    b1big = jnp.repeat((w1[1] + b1[0]).reshape(ch, 1), SUB, axis=0)     # (8ch, 1)
    w2big = jnp.kron(w2.T, eye).astype(matmul_dtype)                    # (8ch, 8ch)
    b2big = jnp.repeat(b2[0].reshape(ch, 1), SUB, axis=0)               # (8ch, 1)
    w3sel = jnp.concatenate([w3[:, :S], w3[:, 2 * S:3 * S]], axis=1).T  # (2S, ch)
    w3big = jnp.kron(w3sel, eye).astype(matmul_dtype)                   # (16S, 8ch)
    b3big = jnp.repeat(
        jnp.concatenate([b3[0, :S], b3[0, 2 * S:3 * S]]).reshape(2 * S, 1),
        SUB, axis=0)                                                    # (16S, 1)

    t2 = pl.pallas_call(
        _fused_kernel,
        out_shape=jax.ShapeDtypeStruct((SUB, cols), jnp.float32),
        grid_spec=pltpu.PrefetchScalarGridSpec(
            num_scalar_prefetch=0,
            grid=grid,
            in_specs=[
                pl.BlockSpec((SUB, tile_cols), lambda i: (0, i)),      # D
                pl.BlockSpec((SUB, tile_cols), lambda i: (0, i)),      # Z
                pl.BlockSpec((ch8, SUB), lambda i: (0, 0)),            # w1d ⊗ I8
                pl.BlockSpec((ch8, 1), lambda i: (0, 0)),              # folded bias 1
                pl.BlockSpec((ch8, ch8), lambda i: (0, 0)),            # w2ᵀ ⊗ I8
                pl.BlockSpec((ch8, 1), lambda i: (0, 0)),              # bias 2
                pl.BlockSpec((2 * S * SUB, ch8), lambda i: (0, 0)),    # w3ᵀ(mu|gama) ⊗ I8
                pl.BlockSpec((2 * S * SUB, 1), lambda i: (0, 0)),      # bias 3 (mu|gama)
            ],
            out_specs=pl.BlockSpec((SUB, tile_cols), lambda i: (0, i)),
        ),
        compiler_params=pltpu.CompilerParams(
            dimension_semantics=("parallel",),
            vmem_limit_bytes=32 * 1024 * 1024),
    )(d2, z2, w1big, b1big, w2big, b2big, w3big, b3big)

    if P_pad != P:
        T = t2.reshape(1, P_pad)[0, :P].reshape(N, 1, H, W)
    else:
        T = t2.reshape(N, 1, H, W)
    return D, T


# --------------------------- params / reference -----------------------------
def init_hypanet_params(key, stage_num=STAGES, channel=HY_CH):
    out_nc = stage_num * 3
    k1, k2, k3, k4, k5, k6 = jax.random.split(key, 6)

    def xavier(k, cin, cout):
        std = (2.0 / (cin + cout)) ** 0.5
        return std * jax.random.normal(k, (cin, cout), jnp.float32)

    w1 = xavier(k1, 2, channel)
    w2 = xavier(k2, channel, channel)
    w3 = xavier(k3, channel, out_nc)
    b1 = jax.random.uniform(k4, (1, channel), jnp.float32, -(2.0 ** -0.5), 2.0 ** -0.5)
    b2 = jax.random.uniform(k5, (1, channel), jnp.float32, -(channel ** -0.5), channel ** -0.5)
    b3 = jax.random.uniform(k6, (1, out_nc), jnp.float32, -(channel ** -0.5), channel ** -0.5)
    return (w1, b1, w2, b2, w3, b3)


def ref_forward(D, Z, params, stage_num=STAGES):
    """Pure-JAX reference of RPCANetHQS.forward (mode='train')."""
    w1, b1, w2, b2, w3, b3 = params

    def conv1x1(x, w, b):  # w: (cin, cout), b: (1, cout)
        return jnp.einsum('nchw,co->nohw', x, w) + b[0][None, :, None, None]

    x = jnp.concatenate([D, jnp.ones_like(D)], axis=1)
    h = jax.nn.relu(conv1x1(x, w1, b1))
    h = jax.nn.relu(conv1x1(h, w2, b2))
    y = conv1x1(h, w3, b3)
    y = jnp.maximum(y, 0.0) + jnp.log(1.0 + jnp.exp(-jnp.abs(y))) + 1e-6

    S = stage_num
    mu, gama = y[:, :S], y[:, 2 * S:]
    T = jnp.zeros_like(D)
    for i in range(S):
        mui, gi = mu[:, i:i + 1], gama[:, i:i + 1]
        B = (D - T + mui * Z) / (1.0 + mui)
        xx = D - B
        param = jnp.maximum(gi, 0.0)
        T = jnp.maximum(0.0, xx - param) + jnp.minimum(0.0, xx + param)
        T = jnp.maximum(T, 0.0)
    return D, T


if __name__ == "__main__":
    key = jax.random.PRNGKey(0)
    k_d, k_z, k_p = jax.random.split(key, 3)
    N, H, W = 2, 16, 16
    D = jax.random.normal(k_d, (N, 1, H, W), jnp.float32)
    Z = jax.random.normal(k_z, (N, 1, H, W), jnp.float32)  # torch.randn_like(D)
    params = init_hypanet_params(k_p)

    fwd = jax.jit(functools.partial(rpcanet_hqs_forward, stage_num=STAGES))
    D_out, T_out = fwd(D, Z, params)
    jax.block_until_ready((D_out, T_out))

    D_ref, T_ref = ref_forward(D, Z, params)
    assert jnp.allclose(D_out, D_ref, atol=1e-5, rtol=1e-5)
    assert jnp.allclose(T_out, T_ref, atol=1e-5, rtol=1e-5)
    print("KERNEL_OK")
</pallas_src>

<mosaic_0001>
module attributes {stable_mosaic.version = 11 : i64} {
  func.func @_fused_kernel(%arg0: i32, %arg1: memref<8x128xf32, #tpu.memory_space<vmem>>, %arg2: memref<8x128xf32, #tpu.memory_space<vmem>>, %arg3: memref<256x8xf32, #tpu.memory_space<vmem>>, %arg4: memref<256x1xf32, #tpu.memory_space<vmem>>, %arg5: memref<256x256xf32, #tpu.memory_space<vmem>>, %arg6: memref<256x1xf32, #tpu.memory_space<vmem>>, %arg7: memref<96x256xf32, #tpu.memory_space<vmem>>, %arg8: memref<96x1xf32, #tpu.memory_space<vmem>>, %arg9: memref<8x128xf32, #tpu.memory_space<vmem>>) attributes {dimension_semantics = [#tpu.dimension_semantics<parallel>], iteration_bounds = array<i64: 1>, scalar_prefetch = 0 : i64, scratch_operands = 0 : i64, tpu.core_type = #tpu.core_type<tc>, window_params = [{transform_indices = @transform_0, window_bounds = array<i64: 8, 128>}, {transform_indices = @transform_1, window_bounds = array<i64: 8, 128>}, {pipeline_mode = #tpu.pipeline_mode<synchronous>, transform_indices = @transform_2, window_bounds = array<i64: 256, 8>}, {pipeline_mode = #tpu.pipeline_mode<synchronous>, transform_indices = @transform_3, window_bounds = array<i64: 256, 1>}, {pipeline_mode = #tpu.pipeline_mode<synchronous>, transform_indices = @transform_4, window_bounds = array<i64: 256, 256>}, {pipeline_mode = #tpu.pipeline_mode<synchronous>, transform_indices = @transform_5, window_bounds = array<i64: 256, 1>}, {pipeline_mode = #tpu.pipeline_mode<synchronous>, transform_indices = @transform_6, window_bounds = array<i64: 96, 256>}, {pipeline_mode = #tpu.pipeline_mode<synchronous>, transform_indices = @transform_7, window_bounds = array<i64: 96, 1>}, {transform_indices = @transform_8, window_bounds = array<i64: 8, 128>}]} {
    %c0 = arith.constant 0 : index
    %c0_0 = arith.constant 0 : index
    %0 = vector.load %arg1[%c0, %c0_0] : memref<8x128xf32, #tpu.memory_space<vmem>>, vector<8x128xf32>
    %c0_1 = arith.constant 0 : index
    %c0_2 = arith.constant 0 : index
    %1 = vector.load %arg2[%c0_1, %c0_2] : memref<8x128xf32, #tpu.memory_space<vmem>>, vector<8x128xf32>
    %c0_3 = arith.constant 0 : index
    %c0_4 = arith.constant 0 : index
    %2 = vector.load %arg3[%c0_3, %c0_4] : memref<256x8xf32, #tpu.memory_space<vmem>>, vector<256x8xf32>
    %cst = arith.constant dense<0.000000e+00> : vector<256x128xf32>
    %3 = tpu.matmul %2, %0, %cst {dimension_numbers = #tpu.dot_dimension_numbers<[1], [0], [0], [1], [0, 0, 1, 1], [], []>} : vector<256x8xf32>, vector<8x128xf32>, vector<256x128xf32> -> vector<256x128xf32>
    %c0_5 = arith.constant 0 : index
    %c0_6 = arith.constant 0 : index
    %4 = vector.load %arg4[%c0_5, %c0_6] : memref<256x1xf32, #tpu.memory_space<vmem>>, vector<256x1xf32>
    %5 = vector.broadcast %4 : vector<256x1xf32> to vector<256x128xf32>
    %6 = arith.addf %3, %5 : vector<256x128xf32>
    %cst_7 = arith.constant 0.000000e+00 : f32
    %7 = vector.broadcast %cst_7 : f32 to vector<256x128xf32>
    %8 = arith.maximumf %6, %7 : vector<256x128xf32>
    %c0_8 = arith.constant 0 : index
    %c0_9 = arith.constant 0 : index
    %9 = vector.load %arg5[%c0_8, %c0_9] : memref<256x256xf32, #tpu.memory_space<vmem>>, vector<256x256xf32>
    %cst_10 = arith.constant dense<0.000000e+00> : vector<256x128xf32>
    %10 = tpu.matmul %9, %8, %cst_10 {dimension_numbers = #tpu.dot_dimension_numbers<[1], [0], [0], [1], [0, 0, 1, 1], [], []>} : vector<256x256xf32>, vector<256x128xf32>, vector<256x128xf32> -> vector<256x128xf32>
    %c0_11 = arith.constant 0 : index
    %c0_12 = arith.constant 0 : index
    %11 = vector.load %arg6[%c0_11, %c0_12] : memref<256x1xf32, #tpu.memory_space<vmem>>, vector<256x1xf32>
    %12 = vector.broadcast %11 : vector<256x1xf32> to vector<256x128xf32>
    %13 = arith.addf %10, %12 : vector<256x128xf32>
    %cst_13 = arith.constant 0.000000e+00 : f32
    %14 = vector.broadcast %cst_13 : f32 to vector<256x128xf32>
    %15 = arith.maximumf %13, %14 : vector<256x128xf32>
    %c0_14 = arith.constant 0 : index
    %c0_15 = arith.constant 0 : index
    %16 = vector.load %arg7[%c0_14, %c0_15] : memref<96x256xf32, #tpu.memory_space<vmem>>, vector<96x256xf32>
    %cst_16 = arith.constant dense<0.000000e+00> : vector<96x128xf32>
    %17 = tpu.matmul %16, %15, %cst_16 {dimension_numbers = #tpu.dot_dimension_numbers<[1], [0], [0], [1], [0, 0, 1, 1], [], []>} : vector<96x256xf32>, vector<256x128xf32>, vector<96x128xf32> -> vector<96x128xf32>
    %c0_17 = arith.constant 0 : index
    %c0_18 = arith.constant 0 : index
    %18 = vector.load %arg8[%c0_17, %c0_18] : memref<96x1xf32, #tpu.memory_space<vmem>>, vector<96x1xf32>
    %19 = vector.broadcast %18 : vector<96x1xf32> to vector<96x128xf32>
    %20 = arith.addf %17, %19 : vector<96x128xf32>
    %cst_19 = arith.constant 0.000000e+00 : f32
    %21 = vector.broadcast %cst_19 : f32 to vector<96x128xf32>
    %22 = arith.maximumf %20, %21 : vector<96x128xf32>
    %23 = math.absf %20 : vector<96x128xf32>
    %cst_20 = arith.constant 0.000000e+00 : f32
    %24 = vector.broadcast %cst_20 : f32 to vector<96x128xf32>
    %25 = arith.subf %24, %23 : vector<96x128xf32>
    %26 = math.exp %25 : vector<96x128xf32>
    %cst_21 = arith.constant 1.000000e+00 : f32
    %27 = vector.broadcast %cst_21 : f32 to vector<96x128xf32>
    %28 = arith.addf %27, %26 : vector<96x128xf32>
    %29 = math.log %28 : vector<96x128xf32>
    %30 = arith.addf %22, %29 : vector<96x128xf32>
    %cst_22 = arith.constant 9.99999997E-7 : f32
    %31 = vector.broadcast %cst_22 : f32 to vector<96x128xf32>
    %32 = arith.addf %30, %31 : vector<96x128xf32>
    %33 = vector.extract_strided_slice %32 {offsets = [0, 0], sizes = [48, 128], strides = [1, 1]} : vector<96x128xf32> to vector<48x128xf32>
    %cst_23 = arith.constant 1.000000e+00 : f32
    %34 = vector.broadcast %cst_23 : f32 to vector<48x128xf32>
    %35 = arith.addf %34, %33 : vector<48x128xf32>
    %cst_24 = arith.constant 1.000000e+00 : f32
    %36 = vector.broadcast %cst_24 : f32 to vector<48x128xf32>
    %37 = arith.divf %36, %35 : vector<48x128xf32>
    %38 = vector.extract_strided_slice %32 {offsets = [48, 0], sizes = [48, 128], strides = [1, 1]} : vector<96x128xf32> to vector<48x128xf32>
    %cst_25 = arith.constant 0.000000e+00 : f32
    %39 = vector.broadcast %cst_25 : f32 to vector<48x128xf32>
    %40 = arith.maximumf %38, %39 : vector<48x128xf32>
    %41 = arith.subf %0, %1 : vector<8x128xf32>
    %cst_26 = arith.constant 0.000000e+00 : f32
    %42 = vector.broadcast %cst_26 : f32 to vector<8x128xf32>
    %43 = vector.extract_strided_slice %33 {offsets = [0, 0], sizes = [8, 128], strides = [1, 1]} : vector<48x128xf32> to vector<8x128xf32>
    %44 = arith.mulf %43, %41 : vector<8x128xf32>
    %45 = arith.addf %44, %42 : vector<8x128xf32>
    %46 = vector.extract_strided_slice %37 {offsets = [0, 0], sizes = [8, 128], strides = [1, 1]} : vector<48x128xf32> to vector<8x128xf32>
    %47 = arith.mulf %45, %46 : vector<8x128xf32>
    %48 = vector.extract_strided_slice %40 {offsets = [0, 0], sizes = [8, 128], strides = [1, 1]} : vector<48x128xf32> to vector<8x128xf32>
    %49 = arith.subf %47, %48 : vector<8x128xf32>
    %cst_27 = arith.constant 0.000000e+00 : f32
    %50 = vector.broadcast %cst_27 : f32 to vector<8x128xf32>
    %51 = arith.maximumf %49, %50 : vector<8x128xf32>
    %52 = vector.extract_strided_slice %33 {offsets = [8, 0], sizes = [8, 128], strides = [1, 1]} : vector<48x128xf32> to vector<8x128xf32>
    %53 = arith.mulf %52, %41 : vector<8x128xf32>
    %54 = arith.addf %53, %51 : vector<8x128xf32>
    %55 = vector.extract_strided_slice %37 {offsets = [8, 0], sizes = [8, 128], strides = [1, 1]} : vector<48x128xf32> to vector<8x128xf32>
    %56 = arith.mulf %54, %55 : vector<8x128xf32>
    %57 = vector.extract_strided_slice %40 {offsets = [8, 0], sizes = [8, 128], strides = [1, 1]} : vector<48x128xf32> to vector<8x128xf32>
    %58 = arith.subf %56, %57 : vector<8x128xf32>
    %cst_28 = arith.constant 0.000000e+00 : f32
    %59 = vector.broadcast %cst_28 : f32 to vector<8x128xf32>
    %60 = arith.maximumf %58, %59 : vector<8x128xf32>
    %61 = vector.extract_strided_slice %33 {offsets = [16, 0], sizes = [8, 128], strides = [1, 1]} : vector<48x128xf32> to vector<8x128xf32>
    %62 = arith.mulf %61, %41 : vector<8x128xf32>
    %63 = arith.addf %62, %60 : vector<8x128xf32>
    %64 = vector.extract_strided_slice %37 {offsets = [16, 0], sizes = [8, 128], strides = [1, 1]} : vector<48x128xf32> to vector<8x128xf32>
    %65 = arith.mulf %63, %64 : vector<8x128xf32>
    %66 = vector.extract_strided_slice %40 {offsets = [16, 0], sizes = [8, 128], strides = [1, 1]} : vector<48x128xf32> to vector<8x128xf32>
    %67 = arith.subf %65, %66 : vector<8x128xf32>
    %cst_29 = arith.constant 0.000000e+00 : f32
    %68 = vector.broadcast %cst_29 : f32 to vector<8x128xf32>
    %69 = arith.maximumf %67, %68 : vector<8x128xf32>
    %70 = vector.extract_strided_slice %33 {offsets = [24, 0], sizes = [8, 128], strides = [1, 1]} : vector<48x128xf32> to vector<8x128xf32>
    %71 = arith.mulf %70, %41 : vector<8x128xf32>
    %72 = arith.addf %71, %69 : vector<8x128xf32>
    %73 = vector.extract_strided_slice %37 {offsets = [24, 0], sizes = [8, 128], strides = [1, 1]} : vector<48x128xf32> to vector<8x128xf32>
    %74 = arith.mulf %72, %73 : vector<8x128xf32>
    %75 = vector.extract_strided_slice %40 {offsets = [24, 0], sizes = [8, 128], strides = [1, 1]} : vector<48x128xf32> to vector<8x128xf32>
    %76 = arith.subf %74, %75 : vector<8x128xf32>
    %cst_30 = arith.constant 0.000000e+00 : f32
    %77 = vector.broadcast %cst_30 : f32 to vector<8x128xf32>
    %78 = arith.maximumf %76, %77 : vector<8x128xf32>
    %79 = vector.extract_strided_slice %33 {offsets = [32, 0], sizes = [8, 128], strides = [1, 1]} : vector<48x128xf32> to vector<8x128xf32>
    %80 = arith.mulf %79, %41 : vector<8x128xf32>
    %81 = arith.addf %80, %78 : vector<8x128xf32>
    %82 = vector.extract_strided_slice %37 {offsets = [32, 0], sizes = [8, 128], strides = [1, 1]} : vector<48x128xf32> to vector<8x128xf32>
    %83 = arith.mulf %81, %82 : vector<8x128xf32>
    %84 = vector.extract_strided_slice %40 {offsets = [32, 0], sizes = [8, 128], strides = [1, 1]} : vector<48x128xf32> to vector<8x128xf32>
    %85 = arith.subf %83, %84 : vector<8x128xf32>
    %cst_31 = arith.constant 0.000000e+00 : f32
    %86 = vector.broadcast %cst_31 : f32 to vector<8x128xf32>
    %87 = arith.maximumf %85, %86 : vector<8x128xf32>
    %88 = vector.extract_strided_slice %33 {offsets = [40, 0], sizes = [8, 128], strides = [1, 1]} : vector<48x128xf32> to vector<8x128xf32>
    %89 = arith.mulf %88, %41 : vector<8x128xf32>
    %90 = arith.addf %89, %87 : vector<8x128xf32>
    %91 = vector.extract_strided_slice %37 {offsets = [40, 0], sizes = [8, 128], strides = [1, 1]} : vector<48x128xf32> to vector<8x128xf32>
    %92 = arith.mulf %90, %91 : vector<8x128xf32>
    %93 = vector.extract_strided_slice %40 {offsets = [40, 0], sizes = [8, 128], strides = [1, 1]} : vector<48x128xf32> to vector<8x128xf32>
    %94 = arith.subf %92, %93 : vector<8x128xf32>
    %cst_32 = arith.constant 0.000000e+00 : f32
    %95 = vector.broadcast %cst_32 : f32 to vector<8x128xf32>
    %96 = arith.maximumf %94, %95 : vector<8x128xf32>
    %c0_33 = arith.constant 0 : index
    %c0_34 = arith.constant 0 : index
    %97 = vector.load %arg9[%c0_33, %c0_34] : memref<8x128xf32, #tpu.memory_space<vmem>>, vector<8x128xf32>
    tpu.vector_store %arg9[%c0_33, %c0_34], %96 {strides = array<i32>} : memref<8x128xf32, #tpu.memory_space<vmem>>, vector<8x128xf32>,
    return
  }
  func.func @transform_0(%arg0: i32) -> (i32, i32) {
    %c0_i32 = arith.constant 0 : i32
    %c0_i32_0 = arith.constant 0 : i32
    return %c0_i32, %arg0 : i32, i32
  }
  func.func @transform_1(%arg0: i32) -> (i32, i32) {
    %c0_i32 = arith.constant 0 : i32
    %c0_i32_0 = arith.constant 0 : i32
    return %c0_i32, %arg0 : i32, i32
  }
  func.func @transform_2(%arg0: i32) -> (i32, i32) {
    %c0_i32 = arith.constant 0 : i32
    %c0_i32_0 = arith.constant 0 : i32
    %c0_i32_1 = arith.constant 0 : i32
    return %c0_i32, %c0_i32_0 : i32, i32
  }
  func.func @transform_3(%arg0: i32) -> (i32, i32) {
    %c0_i32 = arith.constant 0 : i32
    %c0_i32_0 = arith.constant 0 : i32
    %c0_i32_1 = arith.constant 0 : i32
    return %c0_i32, %c0_i32_0 : i32, i32
  }
  func.func @transform_4(%arg0: i32) -> (i32, i32) {
    %c0_i32 = arith.constant 0 : i32
    %c0_i32_0 = arith.constant 0 : i32
    %c0_i32_1 = arith.constant 0 : i32
    return %c0_i32, %c0_i32_0 : i32, i32
  }
  func.func @transform_5(%arg0: i32) -> (i32, i32) {
    %c0_i32 = arith.constant 0 : i32
    %c0_i32_0 = arith.constant 0 : i32
    %c0_i32_1 = arith.constant 0 : i32
    return %c0_i32, %c0_i32_0 : i32, i32
  }
  func.func @transform_6(%arg0: i32) -> (i32, i32) {
    %c0_i32 = arith.constant 0 : i32
    %c0_i32_0 = arith.constant 0 : i32
    %c0_i32_1 = arith.constant 0 : i32
    return %c0_i32, %c0_i32_0 : i32, i32
  }
  func.func @transform_7(%arg0: i32) -> (i32, i32) {
    %c0_i32 = arith.constant 0 : i32
    %c0_i32_0 = arith.constant 0 : i32
    %c0_i32_1 = arith.constant 0 : i32
    return %c0_i32, %c0_i32_0 : i32, i32
  }
  func.func @transform_8(%arg0: i32) -> (i32, i32) {
    %c0_i32 = arith.constant 0 : i32
    %c0_i32_0 = arith.constant 0 : i32
    return %c0_i32, %arg0 : i32, i32
  }
}

</mosaic_0001>

<bundles_post_ra>
// kernel: squeeze.13
= control target key start
LH: loop header
LB: loop body
LE: loop exit
PB: predicated region body
PF: predicated region fallthrough
CT: control target
= control target key end

     0   :  { %s135_s0 = inlined_call_operand.vmem [shape: f32[512], index: 0, kind: input, shape index: {}]   ;;  %s136_s1 = inlined_call_operand.hbm [shape: f32[2,1,16,16], index: 1, kind: output, shape index: {}]  }
   0x1   :  { %v5_v0 = vld [vmem:[%s135_s0] sm:$0xf] }
   0x2   :  { %6 = vst [vmem:[#allocation2] sm:$0xf] %v5_v0 }
   0x3   :  { %2 = vsyncpa [#allocation1], 0  ;;  %s94_s0 = smov 112   ;;  %s95_s8 = smov 80   ;;  %vm8_vm0 = vcmask 130048  }
   0x4   :  { %s96_s9 = smov 96   ;;  %s97_s10 = smov 64  }
   0x5   :  { %s98_s11 = smov 48   ;;  %s99_s12 = smov 32  }
   0x6   :  { %s100_s13 = smov 16   ;;  %s101_s14 = smov [#allocation0]  }
   0x7   :  { %s56_s15 = sshll.u32 %s101_s14, 4  ;;  %s57_s15 = int_to_ptr.vmem [resolvable:$true] %s56_s15 }
   0x8   :  { %s70_s16 = scalar_lea.vmem %s57_s15, 512  ;;  %p75_p1 = scmp.lt.s32.totalorder %s57_s15, %s57_s15 }
   0x9   :  { %v10_v1 = vld [vmem:[#allocation2] sm:$0xf]   ;;  %p71_p0 = scmp.ne.s32.totalorder %s57_s15, %s70_s16  ;;  %p76_p2 = scmp.lt.s32.totalorder %s70_s16, %s70_s16 }
   0xa   :  { %v22_v2 = vld [vmem:[#allocation2] sm:$0xf]   ;;  %11 = vrot.lane.b32.xlu0 %v10_v1, %s94_s0 }
   0xb   :  { %23 = vrot.lane.b32.xlu1 %v22_v2, %s95_s8  ;;  %v16_v3 = vld [vmem:[#allocation2] sm:$0xf]   ;;  %p77_p3 = por %p76_p2, %p75_p1 }
   0xc   :  { %v28_v4 = vld [vmem:[#allocation2] sm:$0xf]  }
   0xd   :  { %v7_v5 = vld [vmem:[#allocation2] sm:$0xf]   ;;  %p78_p4 = pnand %p77_p3, %p71_p0 }
   0xe   :  { %9 = vst.msk [vmem:[#allocation0] ss:$8 sm:$0xf] %vm8_vm0, %v7_v5   ;;  %17 = vrot.lane.b32.xlu0 %v16_v3, %s96_s9  ;;  %v34_v6 = vld [vmem:[#allocation2] sm:$0xf]  }
   0xf   :  { %29 = vrot.lane.b32.xlu1 %v28_v4, %s97_s10  ;;  %v40_v7 = vld [vmem:[#allocation2] sm:$0xf]  }
  0x10   :  { %v46_v8 = vld [vmem:[#allocation2] sm:$0xf]  }
  0x12   :  { %35 = vrot.lane.b32.xlu0 %v34_v6, %s98_s11 }
  0x13   :  { %41 = vrot.lane.b32.xlu1 %v40_v7, %s99_s12 }
  0x16   :  { %47 = vrot.lane.b32.xlu0 %v46_v8, %s100_s13 }
  0x7c   :  { %v12_v9 = vpop.permute.xlu0 %11  }
  0x7d   :  { %v24_v10 = vpop.permute.xlu1 %23   ;;  %15 = vst.msk [vmem:[#allocation0 + $0x1] ss:$8 sm:$0xf] %vm8_vm0, %v12_v9  }
  0x7e   :  { %27 = vst.msk [vmem:[#allocation0 + $0x3] ss:$8 sm:$0xf] %vm8_vm0, %v24_v10  }
  0x80   :  { %v18_v11 = vpop.permute.xlu0 %17  }
  0x81   :  { %v30_v12 = vpop.permute.xlu1 %29   ;;  %21 = vst.msk [vmem:[#allocation0 + $0x2] ss:$8 sm:$0xf] %vm8_vm0, %v18_v11  }
  0x82   :  { %33 = vst.msk [vmem:[#allocation0 + $0x4] ss:$8 sm:$0xf] %vm8_vm0, %v30_v12  }
  0x84   :  { %v36_v13 = vpop.permute.xlu0 %35  }
  0x85   :  { %v42_v14 = vpop.permute.xlu1 %41   ;;  %39 = vst.msk [vmem:[#allocation0 + $0x5] ss:$8 sm:$0xf] %vm8_vm0, %v36_v13  }
  0x86   :  { %45 = vst.msk [vmem:[#allocation0 + $0x6] ss:$8 sm:$0xf] %vm8_vm0, %v42_v14  }
  0x88   :  { %v48_v15 = vpop.permute.xlu0 %47  }
  0x89   :  { %51 = vst.msk [vmem:[#allocation0 + $0x7] ss:$8 sm:$0xf] %vm8_vm0, %v48_v15  }
  0x8a   :  { %81 = shalt.err (!%p78_p4)
}
  0x8b   :  { %s82_s19 = scalar_lea.hbm %s136_s1, 512 }
  0x8c   :  { %p83_p5 = scmp.ne.s32.totalorder %s136_s1, %s82_s19  ;;  %p86_p6 = scmp.lt.u32.totalorder %s82_s19, %s136_s1 }
  0x8e   :  { %p88_p7 = pnand %p86_p6, %p83_p5 }
  0x90   :  { %91 = shalt.err (!%p88_p7)
}
  0x91   :  { %59 = dma.vmem_to_hbm [thread:$0]  %s57_s15, 512, %s136_s1, [#allocation1]  }
  0x92   :  { %92 = dma.done.wait [#allocation1], 512  }
  0x93   :  { %93 = vsyncadd [#allocation1], 4294966784 }
  0x94   :  { %61 = vsyncpa [#allocation1], 1 }

// kernel: rpcanet_hqs_forward.1
= control target key start
LH: loop header
LB: loop body
LE: loop exit
PB: predicated region body
PF: predicated region fallthrough
CT: control target
= control target key end

     0   :  { %vm255_vm0 = vcmask 64512   ;;  %v1883_v0 = vmov 0   ;;  %s2746_s3 = inlined_call_operand.vmem [shape: f32[256,1], index: 3, kind: input, shape index: {}]   ;;  %s2747_s0 = inlined_call_operand.vmem [shape: f32[8,128], index: 0, kind: input, shape index: {}]   ;;  %s2748_s2 = inlined_call_operand.vmem [shape: f32[256,8], index: 2, kind: input, shape index: {}]   ;;  %s2749_s5 = inlined_call_operand.vmem [shape: f32[256,1], index: 5, kind: input, shape index: {}]   ;;  %s2750_s7 = inlined_call_operand.vmem [shape: f32[96,1], index: 7, kind: input, shape index: {}]   ;;  %s2751_s4 = inlined_call_operand.vmem [shape: f32[256,256], index: 4, kind: input, shape index: {}]   ;;  %s2752_s6 = inlined_call_operand.vmem [shape: f32[96,256], index: 6, kind: input, shape index: {}]   ;;  %s2753_s1 = inlined_call_operand.vmem [shape: f32[8,128], index: 1, kind: input, shape index: {}]   ;;  %s2754_s8 = inlined_call_operand.vmem [shape: f32[8,128], index: 8, kind: output, shape index: {}]  }
   0x1   :  { %1821 = vset.pattern.permute.xlu1 %v1883_v0  ;;  %1820 = vset.pattern.permute.xlu0 %v1883_v0  ;;  %v65_v1 = vld [vmem:[%s2746_s3 + $0x10] sm:$0xff]  ;;  %v63_v2 = vld [vmem:[%s2746_s3] sm:$0xff]  ;;  %v32_v5 = vld [vmem:[%s2748_s2 + $0x8] sm:$0xff] }
   0x2   :  { %v29_v3 = vld [vmem:[%s2747_s0] sm:$0xff]  ;;  %107 = vperm.xlu1 %1821, %v65_v1   ;;  %97 = vperm.xlu0 %1820, %v63_v2   ;;  %v66_v6 = vld [vmem:[%s2746_s3 + $0x18] sm:$0xff]  ;;  %v64_v7 = vld [vmem:[%s2746_s3 + $0x8] sm:$0xff] }
   0x3   :  { %v31_v4 = vld [vmem:[%s2748_s2] sm:$0xff]  ;;  %1656 = vmatprep.subr.mxu0 %v29_v3  ;;  %v33_v8 = vld [vmem:[%s2748_s2 + $0x10] sm:$0xff]  ;;  %v34_v9 = vld [vmem:[%s2748_s2 + $0x18] sm:$0xff] }
   0x4   :  { %1658 = vmatprep.mubr.msk.f32.mxu0 %vm255_vm0, %v31_v4  ;;  %1657 = vmatpush3.msra.mxu0 %v29_v3  ;;  %v68_v10 = vld [vmem:[%s2746_s3 + $0x28] sm:$0xff]  ;;  %v67_v11 = vld [vmem:[%s2746_s3 + $0x20] sm:$0xff]  ;;  %v70_v14 = vld [vmem:[%s2746_s3 + $0x38] sm:$0xff] }
   0x5   :  { %1659 = vmatmul.mubr.msk.f32.vlgmr.msra.gmra.mrb[0].mxu0 %vm255_vm0, %v32_v5  ;;  %v35_v12 = vld [vmem:[%s2748_s2 + $0x20] sm:$0xff]  ;;  %v36_v13 = vld [vmem:[%s2748_s2 + $0x28] sm:$0xff]  ;;  %v69_v15 = vld [vmem:[%s2746_s3 + $0x30] sm:$0xff] }
   0x6   :  { %112 = vperm.xlu1 %1821, %v66_v6   ;;  %102 = vperm.xlu0 %1820, %v64_v7   ;;  %v37_v16 = vld [vmem:[%s2748_s2 + $0x30] sm:$0xff]  ;;  %v38_v17 = vld [vmem:[%s2748_s2 + $0x38] sm:$0xff]  ;;  %v72_v18 = vld [vmem:[%s2746_s3 + $0x48] sm:$0xff] }
   0x7   :  { %1661 = vmatprep.mubr.msk.f32.mxu0 %vm255_vm0, %v33_v8  ;;  %v71_v19 = vld [vmem:[%s2746_s3 + $0x40] sm:$0xff]  ;;  %v40_v21 = vld [vmem:[%s2748_s2 + $0x48] sm:$0xff]  ;;  %v74_v22 = vld [vmem:[%s2746_s3 + $0x58] sm:$0xff] }
   0x8   :  { %v39_v20 = vld [vmem:[%s2748_s2 + $0x40] sm:$0xff]  ;;  %v73_v23 = vld [vmem:[%s2746_s3 + $0x50] sm:$0xff]  ;;  %v42_v25 = vld [vmem:[%s2748_s2 + $0x58] sm:$0xff] }
   0x9   :  { %1662 = vmatmul.mubr.msk.f32.gmra.mrb[2].mxu0 %vm255_vm0, %v34_v9  ;;  %v41_v24 = vld [vmem:[%s2748_s2 + $0x50] sm:$0xff]  ;;  %v76_v26 = vld [vmem:[%s2746_s3 + $0x68] sm:$0xff]  ;;  %v75_v27 = vld [vmem:[%s2746_s3 + $0x60] sm:$0xff] }
   0xa   :  { %122 = vperm.xlu1 %1821, %v68_v10   ;;  %117 = vperm.xlu0 %1820, %v67_v11   ;;  %v43_v28 = vld [vmem:[%s2748_s2 + $0x60] sm:$0xff]  ;;  %v44_v29 = vld [vmem:[%s2748_s2 + $0x68] sm:$0xff]  ;;  %v78_v30 = vld [vmem:[%s2746_s3 + $0x78] sm:$0xff] }
   0xb   :  { %1664 = vmatprep.mubr.msk.f32.mxu0 %vm255_vm0, %v35_v12  ;;  %v77_v31 = vld [vmem:[%s2746_s3 + $0x70] sm:$0xff]  ;;  %v46_v33 = vld [vmem:[%s2748_s2 + $0x78] sm:$0xff]  ;;  %v80_v34 = vld [vmem:[%s2746_s3 + $0x88] sm:$0xff] }
   0xc   :  { %v45_v32 = vld [vmem:[%s2748_s2 + $0x70] sm:$0xff]  ;;  %v79_v35 = vld [vmem:[%s2746_s3 + $0x80] sm:$0xff]  ;;  %v48_v37 = vld [vmem:[%s2748_s2 + $0x88] sm:$0xff] }
   0xd   :  { %1665 = vmatmul.mubr.msk.f32.gmra.mrb[4].mxu0 %vm255_vm0, %v36_v13  ;;  %v47_v36 = vld [vmem:[%s2748_s2 + $0x80] sm:$0xff]  ;;  %v82_v38 = vld [vmem:[%s2746_s3 + $0x98] sm:$0xff]  ;;  %v81_v39 = vld [vmem:[%s2746_s3 + $0x90] sm:$0xff] }
   0xe   :  { %132 = vperm.xlu1 %1821, %v70_v14   ;;  %127 = vperm.xlu0 %1820, %v69_v15   ;;  %v49_v40 = vld [vmem:[%s2748_s2 + $0x90] sm:$0xff]  ;;  %v50_v41 = vld [vmem:[%s2748_s2 + $0x98] sm:$0xff]  ;;  %v84_v42 = vld [vmem:[%s2746_s3 + $0xa8] sm:$0xff] }
   0xf   :  { %1667 = vmatprep.mubr.msk.f32.mxu0 %vm255_vm0, %v37_v16  ;;  %v83_v43 = vld [vmem:[%s2746_s3 + $0xa0] sm:$0xff]  ;;  %v52_v45 = vld [vmem:[%s2748_s2 + $0xa8] sm:$0xff]  ;;  %v86_v46 = vld [vmem:[%s2746_s3 + $0xb8] sm:$0xff] }
  0x10   :  { %v51_v44 = vld [vmem:[%s2748_s2 + $0xa0] sm:$0xff]  ;;  %v85_v47 = vld [vmem:[%s2746_s3 + $0xb0] sm:$0xff]  ;;  %v54_v49 = vld [vmem:[%s2748_s2 + $0xb8] sm:$0xff] }
  0x11   :  { %1668 = vmatmul.mubr.msk.f32.gmra.mrb[6].mxu0 %vm255_vm0, %v38_v17  ;;  %v53_v48 = vld [vmem:[%s2748_s2 + $0xb0] sm:$0xff]  ;;  %v88_v50 = vld [vmem:[%s2746_s3 + $0xc8] sm:$0xff]  ;;  %v87_v51 = vld [vmem:[%s2746_s3 + $0xc0] sm:$0xff] }
  0x12   :  { %142 = vperm.xlu1 %1821, %v72_v18   ;;  %137 = vperm.xlu0 %1820, %v71_v19   ;;  %v55_v52 = vld [vmem:[%s2748_s2 + $0xc0] sm:$0xff]  ;;  %v56_v53 = vld [vmem:[%s2748_s2 + $0xc8] sm:$0xff]  ;;  %v90_v54 = vld [vmem:[%s2746_s3 + $0xd8] sm:$0xff] }
  0x13   :  { %1670 = vmatprep.mubr.msk.f32.mxu0 %vm255_vm0, %v39_v20  ;;  %v89_v55 = vld [vmem:[%s2746_s3 + $0xd0] sm:$0xff]  ;;  %v58_v57 = vld [vmem:[%s2748_s2 + $0xd8] sm:$0xff]  ;;  %v92_v58 = vld [vmem:[%s2746_s3 + $0xe8] sm:$0xff]  ;;  %v1884_v20 = vmov 0.0|0.0  }
  0x14   :  { %v57_v56 = vld [vmem:[%s2748_s2 + $0xd0] sm:$0xff]  ;;  %v91_v59 = vld [vmem:[%s2746_s3 + $0xe0] sm:$0xff]  ;;  %v60_v61 = vld [vmem:[%s2748_s2 + $0xe8] sm:$0xff]  ;;  %1706 = vmatprep.subr.bf16.mxu0 %v1884_v20  ;;  %1786 = vmatprep.subr.bf16.mxu1 %v1884_v20 }
  0x15   :  { %1671 = vmatmul.mubr.msk.f32.gmra.mrb[8].mxu0 %vm255_vm0, %v40_v21  ;;  %v59_v60 = vld [vmem:[%s2748_s2 + $0xe0] sm:$0xff]  ;;  %v94_v62 = vld [vmem:[%s2746_s3 + $0xf8] sm:$0xff]  ;;  %v93_v63 = vld [vmem:[%s2746_s3 + $0xf0] sm:$0xff] }
  0x16   :  { %152 = vperm.xlu1 %1821, %v74_v22   ;;  %147 = vperm.xlu0 %1820, %v73_v23   ;;  %v61_v0 = vld [vmem:[%s2748_s2 + $0xf0] sm:$0xff]  ;;  %v62_v1 = vld [vmem:[%s2748_s2 + $0xf8] sm:$0xff]  ;;  %v690_v2 = vld [vmem:[%s2749_s5 + $0x88] sm:$0xff] }
  0x17   :  { %1673 = vmatprep.mubr.msk.f32.mxu0 %vm255_vm0, %v41_v24  ;;  %v689_v3 = vld [vmem:[%s2749_s5 + $0x80] sm:$0xff]  ;;  %v674_v4 = vld [vmem:[%s2749_s5 + $0x8] sm:$0xff]  ;;  %v692_v6 = vld [vmem:[%s2749_s5 + $0x98] sm:$0xff] }
  0x18   :  { %v673_v5 = vld [vmem:[%s2749_s5] sm:$0xff]  ;;  %v691_v7 = vld [vmem:[%s2749_s5 + $0x90] sm:$0xff]  ;;  %v676_v8 = vld [vmem:[%s2749_s5 + $0x18] sm:$0xff] }
  0x19   :  { %1674 = vmatmul.mubr.msk.f32.gmra.mrb[10].mxu0 %vm255_vm0, %v42_v25  ;;  %v675_v9 = vld [vmem:[%s2749_s5 + $0x10] sm:$0xff]  ;;  %v694_v10 = vld [vmem:[%s2749_s5 + $0xa8] sm:$0xff]  ;;  %v693_v11 = vld [vmem:[%s2749_s5 + $0xa0] sm:$0xff] }
  0x1a   :  { %162 = vperm.xlu1 %1821, %v76_v26   ;;  %157 = vperm.xlu0 %1820, %v75_v27   ;;  %v678_v12 = vld [vmem:[%s2749_s5 + $0x28] sm:$0xff]  ;;  %v677_v13 = vld [vmem:[%s2749_s5 + $0x20] sm:$0xff]  ;;  %v696_v14 = vld [vmem:[%s2749_s5 + $0xb8] sm:$0xff] }
  0x1b   :  { %1676 = vmatprep.mubr.msk.f32.mxu0 %vm255_vm0, %v43_v28  ;;  %v695_v15 = vld [vmem:[%s2749_s5 + $0xb0] sm:$0xff]  ;;  %v680_v16 = vld [vmem:[%s2749_s5 + $0x38] sm:$0xff]  ;;  %v698_v18 = vld [vmem:[%s2749_s5 + $0xc8] sm:$0xff] }
  0x1c   :  { %v679_v17 = vld [vmem:[%s2749_s5 + $0x30] sm:$0xff]  ;;  %v697_v19 = vld [vmem:[%s2749_s5 + $0xc0] sm:$0xff]  ;;  %v682_v21 = vld [vmem:[%s2749_s5 + $0x48] sm:$0xff] }
  0x1d   :  { %1677 = vmatmul.mubr.msk.f32.gmra.mrb[12].mxu0 %vm255_vm0, %v44_v29  ;;  %v681_v22 = vld [vmem:[%s2749_s5 + $0x40] sm:$0xff]  ;;  %v700_v23 = vld [vmem:[%s2749_s5 + $0xd8] sm:$0xff]  ;;  %v699_v24 = vld [vmem:[%s2749_s5 + $0xd0] sm:$0xff] }
  0x1e   :  { %172 = vperm.xlu1 %1821, %v78_v30   ;;  %167 = vperm.xlu0 %1820, %v77_v31   ;;  %v684_v25 = vld [vmem:[%s2749_s5 + $0x58] sm:$0xff]  ;;  %v683_v26 = vld [vmem:[%s2749_s5 + $0x50] sm:$0xff]  ;;  %v702_v27 = vld [vmem:[%s2749_s5 + $0xe8] sm:$0xff] }
  0x1f   :  { %1679 = vmatprep.mubr.msk.f32.mxu0 %vm255_vm0, %v45_v32  ;;  %v701_v28 = vld [vmem:[%s2749_s5 + $0xe0] sm:$0xff]  ;;  %v686_v29 = vld [vmem:[%s2749_s5 + $0x68] sm:$0xff]  ;;  %v704_v31 = vld [vmem:[%s2749_s5 + $0xf8] sm:$0xff] }
  0x20   :  { %v685_v30 = vld [vmem:[%s2749_s5 + $0x60] sm:$0xff]  ;;  %v703_v32 = vld [vmem:[%s2749_s5 + $0xf0] sm:$0xff] }
  0x21   :  { %1680 = vmatmul.mubr.msk.f32.gmra.mrb[14].mxu0 %vm255_vm0, %v46_v33  ;;  %v688_v33 = vld [vmem:[%s2749_s5 + $0x78] sm:$0xff] }
  0x22   :  { %182 = vperm.xlu1 %1821, %v80_v34   ;;  %177 = vperm.xlu0 %1820, %v79_v35   ;;  %v687_v34 = vld [vmem:[%s2749_s5 + $0x70] sm:$0xff]  ;;  %v1147_v35 = vld [vmem:[%s2750_s7 + $0x8] sm:$0xff] }
  0x23   :  { %1682 = vmatprep.mubr.msk.f32.mxu0 %vm255_vm0, %v47_v36  ;;  %v1146_v36 = vld [vmem:[%s2750_s7] sm:$0xff] }
  0x25   :  { %1683 = vmatmul.mubr.msk.f32.gmra.mrb[16].mxu0 %vm255_vm0, %v48_v37  ;;  %v1148_v37 = vld [vmem:[%s2750_s7 + $0x10] sm:$0xff] }
  0x26   :  { %192 = vperm.xlu1 %1821, %v82_v38   ;;  %187 = vperm.xlu0 %1820, %v81_v39   ;;  %v1152_v38 = vld [vmem:[%s2750_s7 + $0x30] sm:$0xff]  ;;  %v1149_v39 = vld [vmem:[%s2750_s7 + $0x18] sm:$0xff] }
  0x27   :  { %1685 = vmatprep.mubr.msk.f32.mxu0 %vm255_vm0, %v49_v40  ;;  %v1153_v40 = vld [vmem:[%s2750_s7 + $0x38] sm:$0xff] }
  0x29   :  { %1686 = vmatmul.mubr.msk.f32.gmra.mrb[18].mxu0 %vm255_vm0, %v50_v41  ;;  %v1150_v41 = vld [vmem:[%s2750_s7 + $0x20] sm:$0xff] }
  0x2a   :  { %202 = vperm.xlu1 %1821, %v84_v42   ;;  %197 = vperm.xlu0 %1820, %v83_v43   ;;  %v1154_v42 = vld [vmem:[%s2750_s7 + $0x40] sm:$0xff]  ;;  %v1151_v43 = vld [vmem:[%s2750_s7 + $0x28] sm:$0xff] }
  0x2b   :  { %1688 = vmatprep.mubr.msk.f32.mxu0 %vm255_vm0, %v51_v44  ;;  %v1155_v44 = vld [vmem:[%s2750_s7 + $0x48] sm:$0xff] }
  0x2d   :  { %1689 = vmatmul.mubr.msk.f32.gmra.mrb[20].mxu0 %vm255_vm0, %v52_v45  ;;  %v1157_v45 = vld [vmem:[%s2750_s7 + $0x58] sm:$0xff] }
  0x2e   :  { %212 = vperm.xlu1 %1821, %v86_v46   ;;  %207 = vperm.xlu0 %1820, %v85_v47   ;;  %v1156_v46 = vld [vmem:[%s2750_s7 + $0x50] sm:$0xff]  ;;  %v610_v47 = vld [vmem:[%s2751_s4 + $0x8] sm:$0xff] }
  0x2f   :  { %1691 = vmatprep.mubr.msk.f32.mxu0 %vm255_vm0, %v53_v48  ;;  %v628_v48 = vld [vmem:[%s2751_s4 + $0x98] sm:$0xff] }
  0x30   :  { %974 = vmatprep.mubr.f32.mxu1 %v628_v48 }
  0x31   :  { %1692 = vmatmul.mubr.msk.f32.gmra.mrb[22].mxu0 %vm255_vm0, %v54_v49 }
  0x32   :  { %222 = vperm.xlu1 %1821, %v88_v50   ;;  %217 = vperm.xlu0 %1820, %v87_v51  }
  0x33   :  { %1694 = vmatprep.mubr.msk.f32.mxu0 %vm255_vm0, %v55_v52 }
  0x35   :  { %1695 = vmatmul.mubr.msk.f32.gmra.mrb[24].mxu0 %vm255_vm0, %v56_v53 }
  0x36   :  { %232 = vperm.xlu1 %1821, %v90_v54   ;;  %227 = vperm.xlu0 %1820, %v89_v55  }
  0x37   :  { %1697 = vmatprep.mubr.msk.f32.mxu0 %vm255_vm0, %v57_v56 }
  0x39   :  { %1698 = vmatmul.mubr.msk.f32.gmra.mrb[26].mxu0 %vm255_vm0, %v58_v57 }
  0x3a   :  { %242 = vperm.xlu1 %1821, %v92_v58   ;;  %237 = vperm.xlu0 %1820, %v91_v59  }
  0x3b   :  { %1700 = vmatprep.mubr.msk.f32.mxu0 %vm255_vm0, %v59_v60 }
  0x3d   :  { %1701 = vmatmul.mubr.msk.f32.gmra.mrb[28].mxu0 %vm255_vm0, %v60_v61 }
  0x3e   :  { %252 = vperm.xlu1 %1821, %v94_v62   ;;  %247 = vperm.xlu0 %1820, %v93_v63  }
  0x3f   :  { %1703 = vmatprep.mubr.msk.f32.mxu0 %vm255_vm0, %v61_v0 }
  0x41   :  { %1704 = vmatmul.mubr.msk.f32.gmra.mrb[30].mxu0 %vm255_vm0, %v62_v1 }
  0x42   :  { %792 = vperm.xlu1 %1821, %v690_v2   ;;  %787 = vperm.xlu0 %1820, %v689_v3  }
  0x43   :  { %929 = vmatprep.mubr.f32.mxu0 %v610_v47 }
  0x46   :  { %712 = vperm.xlu1 %1821, %v674_v4   ;;  %707 = vperm.xlu0 %1820, %v673_v5  }
  0x4a   :  { %802 = vperm.xlu1 %1821, %v692_v6   ;;  %797 = vperm.xlu0 %1820, %v691_v7  }
  0x4e   :  { %722 = vperm.xlu1 %1821, %v676_v8   ;;  %717 = vperm.xlu0 %1820, %v675_v9  }
  0x52   :  { %812 = vperm.xlu1 %1821, %v694_v10   ;;  %807 = vperm.xlu0 %1820, %v693_v11  }
  0x56   :  { %732 = vperm.xlu1 %1821, %v678_v12   ;;  %727 = vperm.xlu0 %1820, %v677_v13  }
  0x5a   :  { %822 = vperm.xlu1 %1821, %v696_v14   ;;  %817 = vperm.xlu0 %1820, %v695_v15  }
  0x5e   :  { %742 = vperm.xlu1 %1821, %v680_v16   ;;  %737 = vperm.xlu0 %1820, %v679_v17  }
  0x62   :  { %832 = vperm.xlu1 %1821, %v698_v18   ;;  %827 = vperm.xlu0 %1820, %v697_v19  }
  0x66   :  { %752 = vperm.xlu1 %1821, %v682_v21   ;;  %747 = vperm.xlu0 %1820, %v681_v22  }
  0x6a   :  { %842 = vperm.xlu1 %1821, %v700_v23   ;;  %837 = vperm.xlu0 %1820, %v699_v24  }
  0x6e   :  { %762 = vperm.xlu1 %1821, %v684_v25   ;;  %757 = vperm.xlu0 %1820, %v683_v26  }
  0x72   :  { %852 = vperm.xlu1 %1821, %v702_v27   ;;  %847 = vperm.xlu0 %1820, %v701_v28  }
  0x76   :  { %772 = vperm.xlu1 %1821, %v686_v29   ;;  %767 = vperm.xlu0 %1820, %v685_v30  }
  0x7a   :  { %862 = vperm.xlu1 %1821, %v704_v31   ;;  %857 = vperm.xlu0 %1820, %v703_v32  }
  0x7e   :  { %782 = vperm.xlu1 %1821, %v688_v33   ;;  %777 = vperm.xlu0 %1820, %v687_v34  }
  0x81   :  { %v108_v49 = vpop.permute.xlu1 %107  ;;  %v98_v50 = vpop.permute.xlu0 %97 }
  0x82   :  { %1165 = vperm.xlu1 %1821, %v1147_v35   ;;  %1160 = vperm.xlu0 %1820, %v1146_v36  }
  0x85   :  { %v113_v51 = vpop.permute.xlu1 %112  ;;  %v103_v52 = vpop.permute.xlu0 %102 }
  0x86   :  { %1170 = vperm.xlu1 %1821, %v1148_v37   ;;  %1190 = vperm.xlu0 %1820, %v1152_v38  }
  0x89   :  { %v123_v53 = vpop.permute.xlu1 %122  ;;  %v118_v54 = vpop.permute.xlu0 %117 }
  0x8a   :  { %1175 = vperm.xlu1 %1821, %v1149_v39   ;;  %1195 = vperm.xlu0 %1820, %v1153_v40  }
  0x8d   :  { %v133_v55 = vpop.permute.xlu1 %132  ;;  %v128_v56 = vpop.permute.xlu0 %127 }
  0x8e   :  { %1180 = vperm.xlu1 %1821, %v1150_v41   ;;  %1200 = vperm.xlu0 %1820, %v1154_v42  }
  0x91   :  { %v143_v57 = vpop.permute.xlu1 %142  ;;  %v138_v58 = vpop.permute.xlu0 %137 }
  0x92   :  { %1185 = vperm.xlu1 %1821, %v1151_v43   ;;  %1205 = vperm.xlu0 %1820, %v1155_v44  }
  0x95   :  { %v153_v59 = vpop.permute.xlu1 %152  ;;  %v148_v61 = vpop.permute.xlu0 %147 }
  0x96   :  { %1215 = vperm.xlu1 %1821, %v1157_v45   ;;  %1210 = vperm.xlu0 %1820, %v1156_v46  }
  0x99   :  { %v163_v6 = vpop.permute.xlu1 %162  ;;  %v158_v9 = vpop.permute.xlu0 %157 }
  0x9d   :  { %v173_v18 = vpop.permute.xlu1 %172  ;;  %v168_v22 = vpop.permute.xlu0 %167 }
  0xa1   :  { %v183_v32 = vpop.permute.xlu1 %182  ;;  %v178_v35 = vpop.permute.xlu0 %177 }
  0xa5   :  { %v193_v44 = vpop.permute.xlu1 %192  ;;  %v188_v47 = vpop.permute.xlu0 %187 }
  0xd8   :  { %v1660_v60 = vpop.f32.mrb[0].mxu0 }
  0xd9   :  { %v424_v62 = vadd.f32 %v1660_v60, %v103_v52  ;;  %v418_v63 = vpop.f32.mrb[1].mxu0  ;;  %v198_v60 = vpop.permute.xlu0 %197 }
  0xda   :  { %v419_v0 = vadd.f32 %v418_v63, %v98_v50 }
  0xdb   :  { %v578_v1 = vmax.f32 %v424_v62, 0.0 }
  0xdc   :  { %v577_v2 = vmax.f32 %v419_v0, 0.0  ;;  %v1663_v3 = vpop.f32.mrb[2].mxu0 }
  0xdd   :  { %v434_v4 = vadd.f32 %v1663_v3, %v113_v51  ;;  %v428_v5 = vpop.f32.mrb[3].mxu0 }
  0xde   :  { %v1707_v7 = vpack.c.bf16 %v578_v1, %v577_v2  ;;  %v429_v8 = vadd.f32 %v428_v5, %v108_v49 }
  0xdf   :  { %v580_v10 = vmax.f32 %v434_v4, 0.0 }
  0xe0   :  { %v579_v11 = vmax.f32 %v429_v8, 0.0  ;;  %v1666_v12 = vpop.f32.mrb[4].mxu0  ;;  %1708 = vmatpush1.bf16.msra.mxu0 %v1707_v7  ;;  %1802 = vmatpush1.bf16.msra.mxu1 %v1707_v7  ;;  %v208_v8 = vpop.permute.xlu0 %207 }
  0xe1   :  { %v444_v13 = vadd.f32 %v1666_v12, %v123_v53  ;;  %v438_v14 = vpop.f32.mrb[5].mxu0  ;;  %1709 = vmatprep.subr.bf16.mxu0 %v1884_v20  ;;  %1787 = vmatprep.subr.bf16.mxu1 %v1884_v20 }
  0xe2   :  { %v1710_v15 = vpack.c.bf16 %v580_v10, %v579_v11  ;;  %v439_v16 = vadd.f32 %v438_v14, %v118_v54 }
  0xe3   :  { %v582_v17 = vmax.f32 %v444_v13, 0.0 }
  0xe4   :  { %v581_v19 = vmax.f32 %v439_v16, 0.0  ;;  %v1669_v21 = vpop.f32.mrb[6].mxu0  ;;  %1711 = vmatpush1.bf16.msra.mxu0 %v1710_v15  ;;  %1803 = vmatpush1.bf16.msra.mxu1 %v1710_v15 }
  0xe5   :  { %v454_v23 = vadd.f32 %v1669_v21, %v133_v55  ;;  %v448_v24 = vpop.f32.mrb[7].mxu0  ;;  %1712 = vmatprep.subr.bf16.mxu0 %v1884_v20  ;;  %1788 = vmatprep.subr.bf16.mxu1 %v1884_v20 }
  0xe6   :  { %v1713_v25 = vpack.c.bf16 %v582_v17, %v581_v19  ;;  %v449_v26 = vadd.f32 %v448_v24, %v128_v56 }
  0xe7   :  { %v584_v27 = vmax.f32 %v454_v23, 0.0 }
  0xe8   :  { %v583_v28 = vmax.f32 %v449_v26, 0.0  ;;  %v1672_v29 = vpop.f32.mrb[8].mxu0  ;;  %1714 = vmatpush1.bf16.msra.mxu0 %v1713_v25  ;;  %1804 = vmatpush1.bf16.msra.mxu1 %v1713_v25 }
  0xe9   :  { %v464_v30 = vadd.f32 %v1672_v29, %v143_v57  ;;  %v458_v31 = vpop.f32.mrb[9].mxu0  ;;  %1715 = vmatprep.subr.bf16.mxu0 %v1884_v20  ;;  %1789 = vmatprep.subr.bf16.mxu1 %v1884_v20  ;;  %v203_v57 = vpop.permute.xlu1 %202 }
  0xea   :  { %v1716_v33 = vpack.c.bf16 %v584_v27, %v583_v28  ;;  %v459_v34 = vadd.f32 %v458_v31, %v138_v58 }
  0xeb   :  { %v586_v36 = vmax.f32 %v464_v30, 0.0 }
  0xec   :  { %v585_v37 = vmax.f32 %v459_v34, 0.0  ;;  %v1675_v38 = vpop.f32.mrb[10].mxu0  ;;  %1717 = vmatpush1.bf16.msra.mxu0 %v1716_v33  ;;  %1805 = vmatpush1.bf16.msra.mxu1 %v1716_v33 }
  0xed   :  { %v474_v39 = vadd.f32 %v1675_v38, %v153_v59  ;;  %v468_v40 = vpop.f32.mrb[11].mxu0  ;;  %1718 = vmatprep.subr.bf16.mxu0 %v1884_v20  ;;  %1790 = vmatprep.subr.bf16.mxu1 %v1884_v20  ;;  %v213_v5 = vpop.permute.xlu1 %212 }
  0xee   :  { %v1719_v41 = vpack.c.bf16 %v586_v36, %v585_v37  ;;  %v469_v42 = vadd.f32 %v468_v40, %v148_v61 }
  0xef   :  { %v588_v43 = vmax.f32 %v474_v39, 0.0 }
  0xf0   :  { %v587_v45 = vmax.f32 %v469_v42, 0.0  ;;  %v1678_v46 = vpop.f32.mrb[12].mxu0  ;;  %1720 = vmatpush1.bf16.msra.mxu0 %v1719_v41  ;;  %1806 = vmatpush1.bf16.msra.mxu1 %v1719_v41 }
  0xf1   :  { %v484_v48 = vadd.f32 %v1678_v46, %v163_v6  ;;  %v478_v49 = vpop.f32.mrb[13].mxu0  ;;  %1721 = vmatprep.subr.bf16.mxu0 %v1884_v20  ;;  %1791 = vmatprep.subr.bf16.mxu1 %v1884_v20 }
  0xf2   :  { %v1722_v50 = vpack.c.bf16 %v588_v43, %v587_v45  ;;  %v479_v51 = vadd.f32 %v478_v49, %v158_v9 }
  0xf3   :  { %v590_v52 = vmax.f32 %v484_v48, 0.0 }
  0xf4   :  { %v589_v53 = vmax.f32 %v479_v51, 0.0  ;;  %v1681_v54 = vpop.f32.mrb[14].mxu0  ;;  %1723 = vmatpush1.bf16.msra.mxu0 %v1722_v50  ;;  %1807 = vmatpush1.bf16.msra.mxu1 %v1722_v50 }
  0xf5   :  { %v494_v55 = vadd.f32 %v1681_v54, %v173_v18  ;;  %v488_v56 = vpop.f32.mrb[15].mxu0  ;;  %1724 = vmatprep.subr.bf16.mxu0 %v1884_v20  ;;  %1792 = vmatprep.subr.bf16.mxu1 %v1884_v20  ;;  %v223_v18 = vpop.permute.xlu1 %222 }
  0xf6   :  { %v1725_v58 = vpack.c.bf16 %v590_v52, %v589_v53  ;;  %v489_v59 = vadd.f32 %v488_v56, %v168_v22  ;;  %v218_v22 = vpop.permute.xlu0 %217 }
  0xf7   :  { %v592_v61 = vmax.f32 %v494_v55, 0.0 }
  0xf8   :  { %v591_v62 = vmax.f32 %v489_v59, 0.0  ;;  %v1684_v63 = vpop.f32.mrb[16].mxu0  ;;  %1726 = vmatpush1.bf16.msra.mxu0 %v1725_v58  ;;  %1808 = vmatpush1.bf16.msra.mxu1 %v1725_v58 }
  0xf9   :  { %v504_v0 = vadd.f32 %v1684_v63, %v183_v32  ;;  %v498_v1 = vpop.f32.mrb[17].mxu0  ;;  %1727 = vmatprep.subr.bf16.mxu0 %v1884_v20  ;;  %1793 = vmatprep.subr.bf16.mxu1 %v1884_v20  ;;  %v233_v31 = vpop.permute.xlu1 %232 }
  0xfa   :  { %v1728_v2 = vpack.c.bf16 %v592_v61, %v591_v62  ;;  %v499_v3 = vadd.f32 %v498_v1, %v178_v35  ;;  %v228_v34 = vpop.permute.xlu0 %227 }
  0xfb   :  { %v594_v4 = vmax.f32 %v504_v0, 0.0 }
  0xfc   :  { %v593_v6 = vmax.f32 %v499_v3, 0.0  ;;  %v1687_v7 = vpop.f32.mrb[18].mxu0  ;;  %1729 = vmatpush1.bf16.msra.mxu0 %v1728_v2  ;;  %1809 = vmatpush1.bf16.msra.mxu1 %v1728_v2  ;;  %v609_v3 = vld [vmem:[%s2751_s4] sm:$0xff] }
  0xfd   :  { %v514_v9 = vadd.f32 %v1687_v7, %v193_v44  ;;  %v508_v10 = vpop.f32.mrb[19].mxu0  ;;  %1730 = vmatprep.subr.bf16.mxu0 %v1884_v20  ;;  %1794 = vmatprep.subr.bf16.mxu1 %v1884_v20  ;;  %v243_v44 = vpop.permute.xlu1 %242  ;;  %v629_v7 = vld [vmem:[%s2751_s4 + $0xa0] sm:$0xff] }
  0xfe   :  { %v1731_v11 = vpack.c.bf16 %v594_v4, %v593_v6  ;;  %v509_v12 = vadd.f32 %v508_v10, %v188_v47  ;;  %v238_v47 = vpop.permute.xlu0 %237  ;;  %v627_v4 = vld [vmem:[%s2751_s4 + $0x90] sm:$0xff]  ;;  %v630_v6 = vld [vmem:[%s2751_s4 + $0xa8] sm:$0xff]  ;;  %v613_v10 = vld [vmem:[%s2751_s4 + $0x20] sm:$0xff] }
  0xff   :  { %v596_v13 = vmax.f32 %v514_v9, 0.0  ;;  %v632_v9 = vld [vmem:[%s2751_s4 + $0xb8] sm:$0xff] }
 0x100   :  { %v595_v14 = vmax.f32 %v509_v12, 0.0  ;;  %v1690_v15 = vpop.f32.mrb[20].mxu0  ;;  %1732 = vmatpush1.bf16.msra.mxu0 %v1731_v11  ;;  %1810 = vmatpush1.bf16.msra.mxu1 %v1731_v11  ;;  %v631_v11 = vld [vmem:[%s2751_s4 + $0xb0] sm:$0xff]  ;;  %v616_v12 = vld [vmem:[%s2751_s4 + $0x38] sm:$0xff] }
 0x101   :  { %v524_v16 = vadd.f32 %v1690_v15, %v203_v57  ;;  %v518_v17 = vpop.f32.mrb[21].mxu0  ;;  %1733 = vmatprep.subr.bf16.mxu0 %v1884_v20  ;;  %1795 = vmatprep.subr.bf16.mxu1 %v1884_v20  ;;  %v253_v56 = vpop.permute.xlu1 %252  ;;  %v633_v15 = vld [vmem:[%s2751_s4 + $0xc0] sm:$0xff] }
 0x102   :  { %v1734_v19 = vpack.c.bf16 %v596_v13, %v595_v14  ;;  %v519_v21 = vadd.f32 %v518_v17, %v198_v60  ;;  %v248_v59 = vpop.permute.xlu0 %247  ;;  %v634_v13 = vld [vmem:[%s2751_s4 + $0xc8] sm:$0xff]  ;;  %v615_v14 = vld [vmem:[%s2751_s4 + $0x30] sm:$0xff]  ;;  %v636_v17 = vld [vmem:[%s2751_s4 + $0xd8] sm:$0xff] }
 0x103   :  { %v598_v23 = vmax.f32 %v524_v16, 0.0  ;;  %v618_v16 = vld [vmem:[%s2751_s4 + $0x48] sm:$0xff] }
 0x104   :  { %v597_v24 = vmax.f32 %v519_v21, 0.0  ;;  %v1693_v25 = vpop.f32.mrb[22].mxu0  ;;  %1735 = vmatpush1.bf16.msra.mxu0 %v1734_v19  ;;  %1811 = vmatpush1.bf16.msra.mxu1 %v1734_v19  ;;  %v635_v19 = vld [vmem:[%s2751_s4 + $0xd0] sm:$0xff]  ;;  %v620_v21 = vld [vmem:[%s2751_s4 + $0x58] sm:$0xff] }
 0x105   :  { %v534_v26 = vadd.f32 %v1693_v25, %v213_v5  ;;  %v528_v27 = vpop.f32.mrb[23].mxu0  ;;  %1736 = vmatprep.subr.bf16.mxu0 %v1884_v20  ;;  %1796 = vmatprep.subr.bf16.mxu1 %v1884_v20  ;;  %v612_v5 = vld [vmem:[%s2751_s4 + $0x18] sm:$0xff]  ;;  %v622_v25 = vld [vmem:[%s2751_s4 + $0x68] sm:$0xff] }
 0x106   :  { %v1737_v28 = vpack.c.bf16 %v598_v23, %v597_v24  ;;  %v529_v29 = vadd.f32 %v528_v27, %v208_v8  ;;  %v614_v8 = vld [vmem:[%s2751_s4 + $0x28] sm:$0xff]  ;;  %v619_v23 = vld [vmem:[%s2751_s4 + $0x50] sm:$0xff]  ;;  %v637_v24 = vld [vmem:[%s2751_s4 + $0xe0] sm:$0xff] }
 0x107   :  { %v600_v30 = vmax.f32 %v534_v26, 0.0  ;;  %v640_v26 = vld [vmem:[%s2751_s4 + $0xf8] sm:$0xff]  ;;  %v621_v27 = vld [vmem:[%s2751_s4 + $0x60] sm:$0xff] }
 0x108   :  { %v599_v32 = vmax.f32 %v529_v29, 0.0  ;;  %v1696_v33 = vpop.f32.mrb[24].mxu0  ;;  %1738 = vmatpush1.bf16.msra.mxu0 %v1737_v28  ;;  %1812 = vmatpush1.bf16.msra.mxu1 %v1737_v28  ;;  %v639_v28 = vld [vmem:[%s2751_s4 + $0xf0] sm:$0xff]  ;;  %v624_v29 = vld [vmem:[%s2751_s4 + $0x78] sm:$0xff] }
 0x109   :  { %v544_v35 = vadd.f32 %v1696_v33, %v223_v18  ;;  %v538_v36 = vpop.f32.mrb[25].mxu0  ;;  %1739 = vmatprep.subr.bf16.mxu0 %v1884_v20  ;;  %1797 = vmatprep.subr.bf16.mxu1 %v1884_v20  ;;  %v617_v18 = vld [vmem:[%s2751_s4 + $0x40] sm:$0xff]  ;;  %v626_v33 = vld [vmem:[%s2751_s4 + $0x88] sm:$0xff] }
 0x10a   :  { %v1740_v37 = vpack.c.bf16 %v600_v30, %v599_v32  ;;  %v539_v38 = vadd.f32 %v538_v36, %v218_v22  ;;  %v638_v22 = vld [vmem:[%s2751_s4 + $0xe8] sm:$0xff]  ;;  %v641_v32 = vld [vmem:[%s2751_s4 + $0x100] sm:$0xff]  ;;  %v643_v36 = vld [vmem:[%s2751_s4 + $0x110] sm:$0xff] }
 0x10b   :  { %v602_v39 = vmax.f32 %v544_v35, 0.0  ;;  %v642_v30 = vld [vmem:[%s2751_s4 + $0x108] sm:$0xff]  ;;  %v625_v35 = vld [vmem:[%s2751_s4 + $0x80] sm:$0xff] }
 0x10c   :  { %v601_v40 = vmax.f32 %v539_v38, 0.0  ;;  %v1699_v41 = vpop.f32.mrb[26].mxu0  ;;  %1741 = vmatpush1.bf16.msra.mxu0 %v1740_v37  ;;  %1813 = vmatpush1.bf16.msra.mxu1 %v1740_v37  ;;  %v646_v37 = vld [vmem:[%s2751_s4 + $0x128] sm:$0xff]  ;;  %v645_v38 = vld [vmem:[%s2751_s4 + $0x120] sm:$0xff] }
 0x10d   :  { %v554_v42 = vadd.f32 %v1699_v41, %v233_v31  ;;  %v548_v43 = vpop.f32.mrb[27].mxu0  ;;  %1742 = vmatprep.subr.bf16.mxu0 %v1884_v20  ;;  %1798 = vmatprep.subr.bf16.mxu1 %v1884_v20  ;;  %v623_v31 = vld [vmem:[%s2751_s4 + $0x70] sm:$0xff]  ;;  %v650_v41 = vld [vmem:[%s2751_s4 + $0x148] sm:$0xff] }
 0x10e   :  { %v1743_v45 = vpack.c.bf16 %v602_v39, %v601_v40  ;;  %v549_v46 = vadd.f32 %v548_v43, %v228_v34  ;;  %v644_v34 = vld [vmem:[%s2751_s4 + $0x118] sm:$0xff]  ;;  %v647_v40 = vld [vmem:[%s2751_s4 + $0x130] sm:$0xff] }
 0x10f   :  { %v604_v48 = vmax.f32 %v554_v42, 0.0  ;;  %v648_v39 = vld [vmem:[%s2751_s4 + $0x138] sm:$0xff]  ;;  %v649_v42 = vld [vmem:[%s2751_s4 + $0x140] sm:$0xff] }
 0x110   :  { %v603_v49 = vmax.f32 %v549_v46, 0.0  ;;  %v1702_v50 = vpop.f32.mrb[28].mxu0  ;;  %1744 = vmatpush1.bf16.msra.mxu0 %v1743_v45  ;;  %1814 = vmatpush1.bf16.msra.mxu1 %v1743_v45  ;;  %v652_v43 = vld [vmem:[%s2751_s4 + $0x158] sm:$0xff]  ;;  %v654_v45 = vld [vmem:[%s2751_s4 + $0x168] sm:$0xff]  ;;  %v653_v46 = vld [vmem:[%s2751_s4 + $0x160] sm:$0xff] }
 0x111   :  { %v564_v51 = vadd.f32 %v1702_v50, %v243_v44  ;;  %v558_v52 = vpop.f32.mrb[29].mxu0  ;;  %1745 = vmatprep.subr.bf16.mxu0 %v1884_v20  ;;  %1799 = vmatprep.subr.bf16.mxu1 %v1884_v20  ;;  %v651_v44 = vld [vmem:[%s2751_s4 + $0x150] sm:$0xff]  ;;  %v657_v50 = vld [vmem:[%s2751_s4 + $0x180] sm:$0xff] }
 0x112   :  { %v1746_v53 = vpack.c.bf16 %v604_v48, %v603_v49  ;;  %v559_v54 = vadd.f32 %v558_v52, %v238_v47  ;;  %v656_v47 = vld [vmem:[%s2751_s4 + $0x178] sm:$0xff]  ;;  %v655_v48 = vld [vmem:[%s2751_s4 + $0x170] sm:$0xff]  ;;  %v658_v49 = vld [vmem:[%s2751_s4 + $0x188] sm:$0xff] }
 0x113   :  { %v606_v55 = vmax.f32 %v564_v51, 0.0  ;;  %v660_v51 = vld [vmem:[%s2751_s4 + $0x198] sm:$0xff]  ;;  %v659_v52 = vld [vmem:[%s2751_s4 + $0x190] sm:$0xff] }
 0x114   :  { %v605_v57 = vmax.f32 %v559_v54, 0.0  ;;  %v1705_v58 = vpop.f32.mrb[30].mxu0  ;;  %1747 = vmatpush1.bf16.msra.mxu0 %v1746_v53  ;;  %1815 = vmatpush1.bf16.msra.mxu1 %v1746_v53  ;;  %v662_v53 = vld [vmem:[%s2751_s4 + $0x1a8] sm:$0xff]  ;;  %v661_v54 = vld [vmem:[%s2751_s4 + $0x1a0] sm:$0xff] }
 0x115   :  { %v574_v60 = vadd.f32 %v1705_v58, %v253_v56  ;;  %v568_v61 = vpop.f32.mrb[31].mxu0  ;;  %1748 = vmatprep.subr.bf16.mxu0 %v1884_v20  ;;  %1800 = vmatprep.subr.bf16.mxu1 %v1884_v20  ;;  %v663_v56 = vld [vmem:[%s2751_s4 + $0x1b0] sm:$0xff]  ;;  %v665_v58 = vld [vmem:[%s2751_s4 + $0x1c0] sm:$0xff] }
 0x116   :  { %v1749_v62 = vpack.c.bf16 %v606_v55, %v605_v57  ;;  %v569_v63 = vadd.f32 %v568_v61, %v248_v59  ;;  %v664_v55 = vld [vmem:[%s2751_s4 + $0x1b8] sm:$0xff]  ;;  %v666_v57 = vld [vmem:[%s2751_s4 + $0x1c8] sm:$0xff] }
 0x117   :  { %v608_v0 = vmax.f32 %v574_v60, 0.0  ;;  %v668_v59 = vld [vmem:[%s2751_s4 + $0x1d8] sm:$0xff]  ;;  %v667_v60 = vld [vmem:[%s2751_s4 + $0x1d0] sm:$0xff]  ;;  %v670_v61 = vld [vmem:[%s2751_s4 + $0x1e8] sm:$0xff] }
 0x118   :  { %v607_v1 = vmax.f32 %v569_v63, 0.0  ;;  %1750 = vmatpush1.bf16.msra.mxu0 %v1749_v62  ;;  %1816 = vmatpush1.bf16.msra.mxu1 %v1749_v62  ;;  %v669_v62 = vld [vmem:[%s2751_s4 + $0x1e0] sm:$0xff]  ;;  %v672_v63 = vld [vmem:[%s2751_s4 + $0x1f8] sm:$0xff] }
 0x119   :  { %1751 = vmatprep.subr.bf16.mxu0 %v1884_v20  ;;  %1801 = vmatprep.subr.bf16.mxu1 %v1884_v20  ;;  %v611_v20 = vld [vmem:[%s2751_s4 + $0x10] sm:$0xff] }
 0x11a   :  { %v1752_v2 = vpack.c.bf16 %v608_v0, %v607_v1  ;;  %v671_v0 = vld [vmem:[%s2751_s4 + $0x1f0] sm:$0xff]  ;;  %v2513_v1 = vpop.permute.xlu1 %792 }
 0x11c   :  { %1753 = vmatpush1.bf16.msra.mxu0 %v1752_v2  ;;  %1817 = vmatpush1.bf16.msra.mxu1 %v1752_v2  ;;  %v2515_v2 = vpop.permute.xlu0 %787 }
 0x11f   :  { %930 = vmatmul.mubr.f32.vlgmr.msra.gmra.mrb[32].mxu0 %v609_v3  ;;  %975 = vmatmul.mubr.f32.vlgmr.msra.gmra.mrb[0].mxu1 %v627_v4  ;;  %v713_v3 = vpop.permute.xlu1 %712 }
 0x120   :  { %934 = vmatprep.mubr.f32.mxu0 %v612_v5  ;;  %979 = vmatprep.mubr.f32.mxu1 %v630_v6  ;;  %v708_v4 = vpop.permute.xlu0 %707 }
 0x123   :  { %935 = vmatmul.mubr.f32.gmra.mrb[34].mxu0 %v611_v20  ;;  %980 = vmatmul.mubr.f32.gmra.mrb[2].mxu1 %v629_v7  ;;  %v2517_v5 = vpop.permute.xlu1 %802 }
 0x124   :  { %939 = vmatprep.mubr.f32.mxu0 %v614_v8  ;;  %984 = vmatprep.mubr.f32.mxu1 %v632_v9  ;;  %v2519_v6 = vpop.permute.xlu0 %797 }
 0x127   :  { %940 = vmatmul.mubr.f32.gmra.mrb[36].mxu0 %v613_v10  ;;  %985 = vmatmul.mubr.f32.gmra.mrb[4].mxu1 %v631_v11  ;;  %v723_v20 = vpop.permute.xlu1 %722 }
 0x128   :  { %944 = vmatprep.mubr.f32.mxu0 %v616_v12  ;;  %989 = vmatprep.mubr.f32.mxu1 %v634_v13  ;;  %v718_v7 = vpop.permute.xlu0 %717 }
 0x12b   :  { %945 = vmatmul.mubr.f32.gmra.mrb[38].mxu0 %v615_v14  ;;  %990 = vmatmul.mubr.f32.gmra.mrb[6].mxu1 %v633_v15  ;;  %v2521_v8 = vpop.permute.xlu1 %812 }
 0x12c   :  { %949 = vmatprep.mubr.f32.mxu0 %v618_v16  ;;  %994 = vmatprep.mubr.f32.mxu1 %v636_v17  ;;  %v2523_v9 = vpop.permute.xlu0 %807  ;;  %v1123_v16 = vld [vmem:[%s2752_s6 + $0x8] sm:$0xff] }
 0x12f   :  { %950 = vmatmul.mubr.f32.gmra.mrb[40].mxu0 %v617_v18  ;;  %995 = vmatmul.mubr.f32.gmra.mrb[8].mxu1 %v635_v19  ;;  %v2525_v10 = vpop.permute.xlu1 %732 }
 0x130   :  { %954 = vmatprep.mubr.f32.mxu0 %v620_v21  ;;  %999 = vmatprep.mubr.f32.mxu1 %v638_v22  ;;  %v728_v11 = vpop.permute.xlu0 %727 }
 0x133   :  { %955 = vmatmul.mubr.f32.gmra.mrb[42].mxu0 %v619_v23  ;;  %1000 = vmatmul.mubr.f32.gmra.mrb[10].mxu1 %v637_v24  ;;  %v2527_v12 = vpop.permute.xlu1 %822 }
 0x134   :  { %959 = vmatprep.mubr.f32.mxu0 %v622_v25  ;;  %1004 = vmatprep.mubr.f32.mxu1 %v640_v26  ;;  %v2529_v13 = vpop.permute.xlu0 %817 }
 0x137   :  { %960 = vmatmul.mubr.f32.gmra.mrb[44].mxu0 %v621_v27  ;;  %1005 = vmatmul.mubr.f32.gmra.mrb[12].mxu1 %v639_v28  ;;  %v2531_v14 = vpop.permute.xlu1 %742 }
 0x138   :  { %964 = vmatprep.mubr.f32.mxu0 %v624_v29  ;;  %1009 = vmatprep.mubr.f32.mxu1 %v642_v30  ;;  %v2533_v15 = vpop.permute.xlu0 %737 }
 0x13b   :  { %965 = vmatmul.mubr.f32.gmra.mrb[46].mxu0 %v623_v31  ;;  %1010 = vmatmul.mubr.f32.gmra.mrb[14].mxu1 %v641_v32  ;;  %v2538_v17 = vpop.permute.xlu1 %832 }
 0x13c   :  { %969 = vmatprep.mubr.f32.mxu0 %v626_v33  ;;  %1014 = vmatprep.mubr.f32.mxu1 %v644_v34  ;;  %v2540_v18 = vpop.permute.xlu0 %827 }
 0x13f   :  { %970 = vmatmul.mubr.f32.gmra.mrb[48].mxu0 %v625_v35  ;;  %1015 = vmatmul.mubr.f32.gmra.mrb[16].mxu1 %v643_v36  ;;  %v2542_v19 = vpop.permute.xlu1 %752 }
 0x140   :  { %1019 = vmatprep.mubr.f32.mxu1 %v646_v37  ;;  %1282 = vmatprep.mubr.f32.mxu0 %v1123_v16  ;;  %v2544_v21 = vpop.permute.xlu0 %747 }
 0x143   :  { %1020 = vmatmul.mubr.f32.gmra.mrb[18].mxu1 %v645_v38  ;;  %v2546_v22 = vpop.permute.xlu1 %842 }
 0x144   :  { %1024 = vmatprep.mubr.f32.mxu1 %v648_v39  ;;  %v2548_v23 = vpop.permute.xlu0 %837 }
 0x147   :  { %1025 = vmatmul.mubr.f32.gmra.mrb[20].mxu1 %v647_v40  ;;  %v763_v24 = vpop.permute.xlu1 %762 }
 0x148   :  { %1029 = vmatprep.mubr.f32.mxu1 %v650_v41  ;;  %v758_v25 = vpop.permute.xlu0 %757 }
 0x14b   :  { %1030 = vmatmul.mubr.f32.gmra.mrb[22].mxu1 %v649_v42  ;;  %v2550_v26 = vpop.permute.xlu1 %852 }
 0x14c   :  { %1034 = vmatprep.mubr.f32.mxu1 %v652_v43  ;;  %v2552_v27 = vpop.permute.xlu0 %847 }
 0x14f   :  { %1035 = vmatmul.mubr.f32.gmra.mrb[24].mxu1 %v651_v44  ;;  %v773_v38 = vpop.permute.xlu1 %772 }
 0x150   :  { %1039 = vmatprep.mubr.f32.mxu1 %v654_v45  ;;  %v768_v39 = vpop.permute.xlu0 %767 }
 0x153   :  { %1040 = vmatmul.mubr.f32.gmra.mrb[26].mxu1 %v653_v46 }
 0x154   :  { %1044 = vmatprep.mubr.f32.mxu1 %v656_v47 }
 0x157   :  { %1045 = vmatmul.mubr.f32.gmra.mrb[28].mxu1 %v655_v48 }
 0x158   :  { %1049 = vmatprep.mubr.f32.mxu1 %v658_v49 }
 0x15b   :  { %1050 = vmatmul.mubr.f32.gmra.mrb[30].mxu1 %v657_v50 }
 0x15c   :  { %1054 = vmatprep.mubr.f32.mxu1 %v660_v51 }
 0x15f   :  { %1055 = vmatmul.mubr.f32.gmra.mrb[32].mxu1 %v659_v52 }
 0x160   :  { %1059 = vmatprep.mubr.f32.mxu1 %v662_v53 }
 0x163   :  { %1060 = vmatmul.mubr.f32.gmra.mrb[34].mxu1 %v661_v54 }
 0x164   :  { %1064 = vmatprep.mubr.f32.mxu1 %v664_v55 }
 0x167   :  { %1065 = vmatmul.mubr.f32.gmra.mrb[36].mxu1 %v663_v56 }
 0x168   :  { %1069 = vmatprep.mubr.f32.mxu1 %v666_v57 }
 0x16b   :  { %1070 = vmatmul.mubr.f32.gmra.mrb[38].mxu1 %v665_v58  ;;  %v2560_v58 = vpop.permute.xlu1 %862 }
 0x16c   :  { %1074 = vmatprep.mubr.f32.mxu1 %v668_v59  ;;  %v2562_v59 = vpop.permute.xlu0 %857 }
 0x16f   :  { %1075 = vmatmul.mubr.f32.gmra.mrb[40].mxu1 %v667_v60 }
 0x170   :  { %1079 = vmatprep.mubr.f32.mxu1 %v670_v61 }
 0x173   :  { %1080 = vmatmul.mubr.f32.gmra.mrb[42].mxu1 %v669_v62 }
 0x174   :  { %1084 = vmatprep.mubr.f32.mxu1 %v672_v63 }
 0x177   :  { %1085 = vmatmul.mubr.f32.gmra.mrb[44].mxu1 %v671_v0 }
 0x1f2   :  { %v931_v28 = vpop.f32.mrb[32].mxu0  ;;  %v2554_v29 = vpop.f32.mrb[0].mxu1 }
 0x1f3   :  { %v978_v30 = vpop.f32.mrb[1].mxu1  ;;  %v933_v31 = vpop.f32.mrb[33].mxu0  ;;  %v932_v32 = vadd.f32 %v931_v28, %v708_v4 }
 0x1f5   :  { %v1090_v40 = vmax.f32 %v932_v32, 0.0 }
 0x1f6   :  { %v936_v33 = vpop.f32.mrb[34].mxu0  ;;  %v981_v34 = vpop.f32.mrb[2].mxu1 }
 0x1f7   :  { %v937_v35 = vadd.f32 %v936_v33, %v713_v3  ;;  %v983_v36 = vpop.f32.mrb[3].mxu1  ;;  %v938_v37 = vpop.f32.mrb[35].mxu0  ;;  %v982_v42 = vadd.f32 %v981_v34, %v758_v25 }
 0x1f8   :  { %v783_v36 = vpop.permute.xlu1 %782 }
 0x1f9   :  { %v1091_v41 = vmax.f32 %v937_v35, 0.0  ;;  %v1100_v49 = vmax.f32 %v982_v42, 0.0  ;;  %v778_v35 = vpop.permute.xlu0 %777 }
 0x1fa   :  { %v941_v43 = vpop.f32.mrb[36].mxu0  ;;  %v986_v44 = vpop.f32.mrb[4].mxu1 }
 0x1fb   :  { %v2556_v45 = vpack.c.bf16 %v1091_v41, %v1090_v40  ;;  %v987_v46 = vadd.f32 %v986_v44, %v763_v24  ;;  %v988_v47 = vpop.f32.mrb[5].mxu1  ;;  %v943_v48 = vpop.f32.mrb[37].mxu0  ;;  %v942_v50 = vadd.f32 %v941_v43, %v718_v7 }
 0x1fd   :  { %v1101_v51 = vmax.f32 %v987_v46, 0.0  ;;  %v1092_v60 = vmax.f32 %v942_v50, 0.0 }
 0x1fe   :  { %v946_v52 = vpop.f32.mrb[38].mxu0  ;;  %v991_v53 = vpop.f32.mrb[6].mxu1 }
 0x1ff   :  { %v2558_v54 = vpack.c.bf16 %v1101_v51, %v1100_v49  ;;  %v947_v55 = vadd.f32 %v946_v52, %v723_v20  ;;  %v993_v56 = vpop.f32.mrb[7].mxu1  ;;  %v948_v57 = vpop.f32.mrb[39].mxu0  ;;  %v992_v62 = vadd.f32 %v991_v53, %v768_v39 }
 0x201   :  { %v1093_v61 = vmax.f32 %v947_v55, 0.0  ;;  %v1102_v24 = vmax.f32 %v992_v62, 0.0  ;;  %v977_v55 = vadd.f32 %v2554_v29, %v2542_v19 }
 0x202   :  { %v951_v63 = vpop.f32.mrb[40].mxu0  ;;  %v996_v0 = vpop.f32.mrb[8].mxu1 }
 0x203   :  { %v2564_v3 = vpack.c.bf16 %v1093_v61, %v1092_v60  ;;  %v997_v4 = vadd.f32 %v996_v0, %v773_v38  ;;  %v998_v7 = vpop.f32.mrb[9].mxu1  ;;  %v953_v16 = vpop.f32.mrb[41].mxu0  ;;  %v952_v25 = vadd.f32 %v951_v63, %v728_v11 }
 0x204   :  { %v1099_v16 = vmax.f32 %v977_v55, 0.0 }
 0x205   :  { %v1103_v28 = vmax.f32 %v997_v4, 0.0  ;;  %v1094_v37 = vmax.f32 %v952_v25, 0.0 }
 0x206   :  { %v956_v20 = vpop.f32.mrb[42].mxu0  ;;  %v1001_v30 = vpop.f32.mrb[10].mxu1 }
 0x207   :  { %v2566_v31 = vpack.c.bf16 %v1103_v28, %v1102_v24  ;;  %v957_v32 = vadd.f32 %v956_v20, %v2525_v10  ;;  %v1003_v33 = vpop.f32.mrb[11].mxu1  ;;  %v958_v34 = vpop.f32.mrb[43].mxu0  ;;  %v1002_v40 = vadd.f32 %v1001_v30, %v778_v35 }
 0x209   :  { %v1095_v39 = vmax.f32 %v957_v32, 0.0  ;;  %v1104_v46 = vmax.f32 %v1002_v40, 0.0 }
 0x20a   :  { %v961_v41 = vpop.f32.mrb[44].mxu0  ;;  %v1006_v38 = vpop.f32.mrb[12].mxu1 }
 0x20b   :  { %v1764_v42 = vpack.c.bf16 %v1095_v39, %v1094_v37  ;;  %v1007_v43 = vadd.f32 %v1006_v38, %v783_v36  ;;  %v1008_v44 = vpop.f32.mrb[13].mxu1  ;;  %v963_v11 = vpop.f32.mrb[45].mxu0  ;;  %v962_v47 = vadd.f32 %v961_v41, %v2533_v15 }
 0x20d   :  { %v1105_v48 = vmax.f32 %v1007_v43, 0.0  ;;  %v1096_v56 = vmax.f32 %v962_v47, 0.0 }
 0x20e   :  { %v966_v49 = vpop.f32.mrb[46].mxu0  ;;  %v1011_v50 = vpop.f32.mrb[14].mxu1 }
 0x20f   :  { %v2570_v10 = vpack.c.bf16 %v1105_v48, %v1104_v46  ;;  %v967_v51 = vadd.f32 %v966_v49, %v2531_v14  ;;  %v1013_v52 = vpop.f32.mrb[15].mxu1  ;;  %v968_v53 = vpop.f32.mrb[47].mxu0  ;;  %v1012_v60 = vadd.f32 %v1011_v50, %v2515_v2 }
 0x211   :  { %v1097_v57 = vmax.f32 %v967_v51, 0.0  ;;  %v1106_v14 = vmax.f32 %v1012_v60, 0.0 }
 0x212   :  { %v971_v61 = vpop.f32.mrb[48].mxu0  ;;  %v1016_v62 = vpop.f32.mrb[16].mxu1 }
 0x213   :  { %v1768_v63 = vpack.c.bf16 %v1097_v57, %v1096_v56  ;;  %v972_v15 = vadd.f32 %v971_v61, %v2544_v21  ;;  %v1017_v0 = vadd.f32 %v1016_v62, %v2513_v1  ;;  %v1018_v4 = vpop.f32.mrb[17].mxu1  ;;  %v973_v7 = vpop.f32.mrb[49].mxu0 }
 0x215   :  { %v1098_v24 = vmax.f32 %v972_v15, 0.0  ;;  %v1107_v25 = vmax.f32 %v1017_v0, 0.0 }
 0x216   :  { %v1021_v28 = vpop.f32.mrb[18].mxu1 }
 0x217   :  { %v1772_v20 = vpack.c.bf16 %v1099_v16, %v1098_v24  ;;  %v1754_v19 = vpack.c.bf16 %v1107_v25, %v1106_v14  ;;  %v1023_v29 = vpop.f32.mrb[19].mxu1  ;;  %v1022_v30 = vadd.f32 %v1021_v28, %v2519_v6 }
 0x219   :  { %1755 = vmatprep.subr.bf16.mxu0 %v1754_v19  ;;  %v1108_v1 = vmax.f32 %v1022_v30, 0.0 }
 0x21a   :  { %v1026_v2 = vpop.f32.mrb[20].mxu1  ;;  %1757 = vmatpush3.bf16.msra.mxu0 %v2556_v45 }
 0x21b   :  { %v1027_v21 = vadd.f32 %v1026_v2, %v2517_v5  ;;  %v1028_v32 = vpop.f32.mrb[21].mxu1 }
 0x21c   :  { %v1128_v32 = vld [vmem:[%s2752_s6 + $0x30] sm:$0xff] }
 0x21d   :  { %v1109_v33 = vmax.f32 %v1027_v21, 0.0  ;;  %v1129_v21 = vld [vmem:[%s2752_s6 + $0x38] sm:$0xff] }
 0x21e   :  { %v1031_v34 = vpop.f32.mrb[22].mxu1 }
 0x21f   :  { %v1758_v35 = vpack.c.bf16 %v1109_v33, %v1108_v1  ;;  %v1033_v36 = vpop.f32.mrb[23].mxu1  ;;  %v1032_v37 = vadd.f32 %v1031_v34, %v2523_v9  ;;  %v1131_v1 = vld [vmem:[%s2752_s6 + $0x48] sm:$0xff]  ;;  %v1130_v33 = vld [vmem:[%s2752_s6 + $0x40] sm:$0xff]  ;;  %v1133_v34 = vld [vmem:[%s2752_s6 + $0x58] sm:$0xff] }
 0x220   :  { %v1135_v36 = vld [vmem:[%s2752_s6 + $0x68] sm:$0xff] }
 0x221   :  { %1759 = vmatprep.subr.bf16.mxu0 %v1758_v35  ;;  %v1110_v41 = vmax.f32 %v1032_v37, 0.0  ;;  %v1132_v35 = vld [vmem:[%s2752_s6 + $0x50] sm:$0xff]  ;;  %v1134_v37 = vld [vmem:[%s2752_s6 + $0x60] sm:$0xff] }
 0x222   :  { %v1036_v39 = vpop.f32.mrb[24].mxu1  ;;  %1761 = vmatpush3.bf16.msra.mxu0 %v2564_v3 }
 0x223   :  { %v1037_v6 = vadd.f32 %v1036_v39, %v2521_v8  ;;  %v1038_v40 = vpop.f32.mrb[25].mxu1  ;;  %v1137_v39 = vld [vmem:[%s2752_s6 + $0x78] sm:$0xff] }
 0x224   :  { %v1139_v40 = vld [vmem:[%s2752_s6 + $0x88] sm:$0xff] }
 0x225   :  { %v1111_v38 = vmax.f32 %v1037_v6, 0.0  ;;  %v1136_v6 = vld [vmem:[%s2752_s6 + $0x70] sm:$0xff] }
 0x226   :  { %v1041_v45 = vpop.f32.mrb[26].mxu1 }
 0x227   :  { %v1762_v43 = vpack.c.bf16 %v1111_v38, %v1110_v41  ;;  %v1043_v5 = vpop.f32.mrb[27].mxu1  ;;  %v1042_v44 = vadd.f32 %v1041_v45, %v2529_v13  ;;  %v1138_v41 = vld [vmem:[%s2752_s6 + $0x80] sm:$0xff]  ;;  %v1141_v38 = vld [vmem:[%s2752_s6 + $0x98] sm:$0xff]  ;;  %v1140_v45 = vld [vmem:[%s2752_s6 + $0x90] sm:$0xff] }
 0x228   :  { %v1142_v5 = vld [vmem:[%s2752_s6 + $0xa0] sm:$0xff] }
 0x229   :  { %1763 = vmatprep.subr.bf16.mxu0 %v1762_v43  ;;  %v1112_v47 = vmax.f32 %v1042_v44, 0.0  ;;  %v1143_v43 = vld [vmem:[%s2752_s6 + $0xa8] sm:$0xff]  ;;  %v1145_v44 = vld [vmem:[%s2752_s6 + $0xb8] sm:$0xff] }
 0x22a   :  { %v1046_v11 = vpop.f32.mrb[28].mxu1  ;;  %1765 = vmatpush3.bf16.msra.mxu0 %v1764_v42 }
 0x22b   :  { %v1047_v46 = vadd.f32 %v1046_v11, %v2527_v12  ;;  %v1048_v9 = vpop.f32.mrb[29].mxu1  ;;  %v1144_v11 = vld [vmem:[%s2752_s6 + $0xb0] sm:$0xff] }
 0x22d   :  { %v1113_v48 = vmax.f32 %v1047_v46, 0.0  ;;  %v1166_v46 = vpop.permute.xlu1 %1165 }
 0x22e   :  { %v1051_v49 = vpop.f32.mrb[30].mxu1 }
 0x22f   :  { %v1766_v3 = vpack.c.bf16 %v1113_v48, %v1112_v47  ;;  %v1053_v50 = vpop.f32.mrb[31].mxu1  ;;  %v1052_v8 = vadd.f32 %v1051_v49, %v2540_v18  ;;  %v1161_v49 = vpop.permute.xlu0 %1160 }
 0x231   :  { %1767 = vmatprep.subr.bf16.mxu0 %v1766_v3  ;;  %v1114_v13 = vmax.f32 %v1052_v8, 0.0  ;;  %v1171_v8 = vpop.permute.xlu1 %1170 }
 0x232   :  { %v1056_v51 = vpop.f32.mrb[32].mxu1  ;;  %1769 = vmatpush3.bf16.msra.mxu0 %v1768_v63 }
 0x233   :  { %v1057_v52 = vadd.f32 %v1056_v51, %v2538_v17  ;;  %v1058_v53 = vpop.f32.mrb[33].mxu1 }
 0x235   :  { %v1115_v55 = vmax.f32 %v1057_v52, 0.0 }
 0x236   :  { %v1061_v56 = vpop.f32.mrb[34].mxu1 }
 0x237   :  { %v1770_v42 = vpack.c.bf16 %v1115_v55, %v1114_v13  ;;  %v1063_v57 = vpop.f32.mrb[35].mxu1  ;;  %v1062_v12 = vadd.f32 %v1061_v56, %v2548_v23 }
 0x239   :  { %1771 = vmatprep.subr.bf16.mxu0 %v1770_v42  ;;  %v1116_v18 = vmax.f32 %v1062_v12, 0.0 }
 0x23a   :  { %v1066_v60 = vpop.f32.mrb[36].mxu1  ;;  %1773 = vmatpush3.bf16.msra.mxu0 %v1772_v20 }
 0x23b   :  { %v1067_v61 = vadd.f32 %v1066_v60, %v2546_v22  ;;  %v1068_v62 = vpop.f32.mrb[37].mxu1 }
 0x23d   :  { %v1117_v15 = vmax.f32 %v1067_v61, 0.0  ;;  %v1176_v61 = vpop.permute.xlu1 %1175 }
 0x23e   :  { %v1071_v0 = vpop.f32.mrb[38].mxu1 }
 0x23f   :  { %v1774_v63 = vpack.c.bf16 %v1117_v15, %v1116_v18  ;;  %v1073_v4 = vpop.f32.mrb[39].mxu1  ;;  %v1072_v17 = vadd.f32 %v1071_v0, %v2552_v27 }
 0x241   :  { %1775 = vmatprep.subr.bf16.mxu0 %v1774_v63  ;;  %v1118_v14 = vmax.f32 %v1072_v17, 0.0 }
 0x242   :  { %v1076_v7 = vpop.f32.mrb[40].mxu1  ;;  %1777 = vmatpush3.bf16.msra.mxu0 %v2558_v54 }
 0x243   :  { %v1077_v16 = vadd.f32 %v1076_v7, %v2550_v26  ;;  %v1078_v23 = vpop.f32.mrb[41].mxu1  ;;  %v1122_v26 = vld [vmem:[%s2752_s6] sm:$0xff] }
 0x245   :  { %v1119_v24 = vmax.f32 %v1077_v16, 0.0 }
 0x246   :  { %v1081_v25 = vpop.f32.mrb[42].mxu1 }
 0x247   :  { %v1778_v28 = vpack.c.bf16 %v1119_v24, %v1118_v14  ;;  %v1083_v22 = vpop.f32.mrb[43].mxu1  ;;  %v1082_v20 = vadd.f32 %v1081_v25, %v2562_v59  ;;  %v1125_v59 = vld [vmem:[%s2752_s6 + $0x18] sm:$0xff]  ;;  %v1181_v14 = vpop.permute.xlu1 %1180 }
 0x249   :  { %1779 = vmatprep.subr.bf16.mxu0 %v1778_v28  ;;  %v1120_v30 = vmax.f32 %v1082_v20, 0.0  ;;  %v1191_v20 = vpop.permute.xlu0 %1190 }
 0x24a   :  { %v1086_v19 = vpop.f32.mrb[44].mxu1  ;;  %1781 = vmatpush3.bf16.msra.mxu0 %v2566_v31  ;;  %v1127_v31 = vld [vmem:[%s2752_s6 + $0x28] sm:$0xff] }
 0x24b   :  { %v1087_v27 = vadd.f32 %v1086_v19, %v2560_v58  ;;  %v1088_v29 = vpop.f32.mrb[45].mxu1  ;;  %v1124_v58 = vld [vmem:[%s2752_s6 + $0x10] sm:$0xff] }
 0x24d   :  { %v1121_v2 = vmax.f32 %v1087_v27, 0.0 }
 0x24f   :  { %v1782_v54 = vpack.c.bf16 %v1121_v2, %v1120_v30 }
 0x251   :  { %1783 = vmatprep.subr.bf16.mxu0 %v1782_v54 }
 0x252   :  { %1785 = vmatpush3.bf16.msra.mxu0 %v2570_v10  ;;  %v1126_v10 = vld [vmem:[%s2752_s6 + $0x20] sm:$0xff] }
 0x255   :  { %1283 = vmatmul.mubr.f32.vlgmr.msra.gmra.mrb[50].mxu0 %v1122_v26 }
 0x256   :  { %1287 = vmatprep.mubr.f32.mxu0 %v1125_v59 }
 0x259   :  { %1288 = vmatmul.mubr.f32.gmra.mrb[52].mxu0 %v1124_v58  ;;  %v1186_v58 = vpop.permute.xlu1 %1185 }
 0x25a   :  { %1292 = vmatprep.mubr.f32.mxu0 %v1127_v31 }
 0x25d   :  { %1293 = vmatmul.mubr.f32.gmra.mrb[54].mxu0 %v1126_v10 }
 0x25e   :  { %1297 = vmatprep.mubr.f32.mxu0 %v1129_v21 }
 0x261   :  { %1298 = vmatmul.mubr.f32.gmra.mrb[56].mxu0 %v1128_v32 }
 0x262   :  { %1302 = vmatprep.mubr.f32.mxu0 %v1131_v1 }
 0x265   :  { %1303 = vmatmul.mubr.f32.gmra.mrb[58].mxu0 %v1130_v33 }
 0x266   :  { %1307 = vmatprep.mubr.f32.mxu0 %v1133_v34  ;;  %v1196_v34 = vpop.permute.xlu0 %1195 }
 0x269   :  { %1308 = vmatmul.mubr.f32.gmra.mrb[60].mxu0 %v1132_v35 }
 0x26a   :  { %1312 = vmatprep.mubr.f32.mxu0 %v1135_v36 }
 0x26d   :  { %1313 = vmatmul.mubr.f32.gmra.mrb[62].mxu0 %v1134_v37 }
 0x26e   :  { %1317 = vmatprep.mubr.f32.mxu0 %v1137_v39 }
 0x271   :  { %1318 = vmatmul.mubr.f32.gmra.mrb[64].mxu0 %v1136_v6 }
 0x272   :  { %1322 = vmatprep.mubr.f32.mxu0 %v1139_v40 }
 0x275   :  { %1323 = vmatmul.mubr.f32.gmra.mrb[66].mxu0 %v1138_v41 }
 0x276   :  { %1327 = vmatprep.mubr.f32.mxu0 %v1141_v38 }
 0x279   :  { %1328 = vmatmul.mubr.f32.gmra.mrb[68].mxu0 %v1140_v45 }
 0x27a   :  { %1332 = vmatprep.mubr.f32.mxu0 %v1143_v43 }
 0x27d   :  { %1333 = vmatmul.mubr.f32.gmra.mrb[70].mxu0 %v1142_v5 }
 0x27e   :  { %1337 = vmatprep.mubr.f32.mxu0 %v1145_v44 }
 0x281   :  { %1338 = vmatmul.mubr.f32.gmra.mrb[72].mxu0 %v1144_v11 }
 0x328   :  { %v1620_v9 = vpop.f32.mrb[50].mxu0 }
 0x329   :  { %v1621_v47 = vpop.f32.mrb[51].mxu0 }
 0x32a   :  { %v1622_v48 = vadd.f32 %v1621_v47, %v1620_v9 }
 0x32c   :  { %v2666_v3 = vadd.f32 %v1622_v48, %v1161_v49  ;;  %v1623_v50 = vpop.f32.mrb[52].mxu0 }
 0x32d   :  { %v1624_v51 = vpop.f32.mrb[53].mxu0 }
 0x32e   :  { %v1355_v52 = vand.u32 2147483647, %v2666_v3  ;;  %v1625_v53 = vadd.f32 %v1624_v51, %v1623_v50 }
 0x330   :  { %v1367_v13 = vsub.f32 0.0, %v1355_v52  ;;  %v2669_v55 = vadd.f32 %v1625_v53, %v1166_v46  ;;  %v1626_v56 = vpop.f32.mrb[54].mxu0  ;;  %v1201_v46 = vpop.permute.xlu0 %1200 }
 0x331   :  { %v1627_v42 = vpop.f32.mrb[55].mxu0 }
 0x332   :  { %v1379_v57 = vmul.f32 1.442695, %v1367_v13  ;;  %v1356_v12 = vand.u32 2147483647, %v2669_v55  ;;  %v1628_v60 = vadd.f32 %v1627_v42, %v1626_v56  ;;  %v30_v13 = vld [vmem:[%s2753_s1] sm:$0xff]  ;;  %v1343_v56 = vmax.f32 %v2666_v3, 0.0 }
 0x334   :  { %1822 = vpow2.f32 %v1379_v57  ;;  %v1368_v62 = vsub.f32 0.0, %v1356_v12  ;;  %v2672_v18 = vadd.f32 %v1628_v60, %v1171_v8  ;;  %v1629_v15 = vpop.f32.mrb[56].mxu0 }
 0x335   :  { %v1630_v0 = vpop.f32.mrb[57].mxu0 }
 0x336   :  { %v1381_v63 = vmul.f32 1.442695, %v1368_v62  ;;  %v1357_v4 = vand.u32 2147483647, %v2672_v18  ;;  %v1631_v17 = vadd.f32 %v1630_v0, %v1629_v15  ;;  %v1882_v0 = vld [vmem:[%s2747_s0] sm:$0xff] }
 0x338   :  { %1824 = vpow2.f32 %v1381_v63  ;;  %v1369_v7 = vsub.f32 0.0, %v1357_v4  ;;  %v2675_v16 = vadd.f32 %v1631_v17, %v1176_v61  ;;  %v1632_v23 = vpop.f32.mrb[58].mxu0  ;;  %v2699_v63 = vsub.f32 %v1882_v0, %v30_v13  ;;  %v1206_v4 = vpop.permute.xlu0 %1205 }
 0x339   :  { %v1633_v24 = vpop.f32.mrb[59].mxu0 }
 0x33a   :  { %v1383_v25 = vmul.f32 1.442695, %v1369_v7  ;;  %v1358_v28 = vand.u32 2147483647, %v2675_v16  ;;  %v1634_v22 = vadd.f32 %v1633_v24, %v1632_v23 }
 0x33c   :  { %1826 = vpow2.f32 %v1383_v25  ;;  %v1370_v19 = vsub.f32 0.0, %v1358_v28  ;;  %v2678_v27 = vadd.f32 %v1634_v22, %v1181_v14  ;;  %v1635_v29 = vpop.f32.mrb[60].mxu0  ;;  %v1344_v14 = vmax.f32 %v2669_v55, 0.0 }
 0x33d   :  { %v1636_v30 = vpop.f32.mrb[61].mxu0 }
 0x33e   :  { %v1823_v2 = vpop.eup %1822  ;;  %v1385_v54 = vmul.f32 1.442695, %v1370_v19  ;;  %v1359_v26 = vand.u32 2147483647, %v2678_v27  ;;  %v1637_v59 = vadd.f32 %v1636_v30, %v1635_v29  ;;  %v1347_v13 = vmax.f32 %v2678_v27, 0.0 }
 0x33f   :  { %v1403_v31 = vadd.f32 1.0, %v1823_v2 }
 0x340   :  { %1828 = vpow2.f32 %v1385_v54  ;;  %v1371_v10 = vsub.f32 0.0, %v1359_v26  ;;  %v2681_v21 = vadd.f32 %v1637_v59, %v1186_v58  ;;  %v1638_v32 = vpop.f32.mrb[62].mxu0 }
 0x341   :  { %1830 = vlog2.f32 %v1403_v31  ;;  %v1639_v1 = vpop.f32.mrb[63].mxu0 }
 0x342   :  { %v1825_v33 = vpop.eup %1824  ;;  %v1387_v35 = vmul.f32 1.442695, %v1371_v10  ;;  %v1360_v36 = vand.u32 2147483647, %v2681_v21  ;;  %v1640_v37 = vadd.f32 %v1639_v1, %v1638_v32  ;;  %v1211_v1 = vpop.permute.xlu0 %1210 }
 0x343   :  { %v1404_v39 = vadd.f32 1.0, %v1825_v33 }
 0x344   :  { %1832 = vpow2.f32 %v1387_v35  ;;  %v1372_v6 = vsub.f32 0.0, %v1360_v36  ;;  %v2684_v40 = vadd.f32 %v1640_v37, %v1191_v20  ;;  %v1641_v41 = vpop.f32.mrb[64].mxu0 }
 0x345   :  { %1834 = vlog2.f32 %v1404_v39  ;;  %v1642_v38 = vpop.f32.mrb[65].mxu0 }
 0x346   :  { %v1827_v45 = vpop.eup %1826  ;;  %v1389_v43 = vmul.f32 1.442695, %v1372_v6  ;;  %v1361_v5 = vand.u32 2147483647, %v2684_v40  ;;  %v1643_v44 = vadd.f32 %v1642_v38, %v1641_v41 }
 0x347   :  { %v1405_v11 = vadd.f32 1.0, %v1827_v45 }
 0x348   :  { %1836 = vpow2.f32 %v1389_v43  ;;  %v1373_v9 = vsub.f32 0.0, %v1361_v5  ;;  %v2687_v47 = vadd.f32 %v1643_v44, %v1196_v34  ;;  %v1644_v48 = vpop.f32.mrb[66].mxu0  ;;  %v1345_v34 = vmax.f32 %v2672_v18, 0.0 }
 0x349   :  { %1838 = vlog2.f32 %v1405_v11  ;;  %v1645_v49 = vpop.f32.mrb[67].mxu0  ;;  %v1346_v18 = vmax.f32 %v2675_v16, 0.0 }
 0x34a   :  { %v1829_v50 = vpop.eup %1828  ;;  %v1391_v8 = vmul.f32 1.442695, %v1373_v9  ;;  %v1362_v51 = vand.u32 2147483647, %v2687_v47  ;;  %v1646_v52 = vadd.f32 %v1645_v49, %v1644_v48 }
 0x34b   :  { %v1831_v53 = vpop.eup %1830  ;;  %v1406_v42 = vadd.f32 1.0, %v1829_v50 }
 0x34c   :  { %v1416_v57 = vmul.f32 0.6931472, %v1831_v53  ;;  %1840 = vpow2.f32 %v1391_v8  ;;  %v1374_v12 = vsub.f32 0.0, %v1362_v51  ;;  %v2694_v60 = vadd.f32 %v1646_v52, %v1201_v46  ;;  %v1647_v61 = vpop.f32.mrb[68].mxu0  ;;  %v1216_v8 = vpop.permute.xlu1 %1215 }
 0x34d   :  { %1842 = vlog2.f32 %v1406_v42  ;;  %v1648_v62 = vpop.f32.mrb[69].mxu0 }
 0x34e   :  { %v1833_v15 = vpop.eup %1832  ;;  %v1439_v17 = vadd.f32 %v1416_v57, %v1343_v56  ;;  %v1393_v7 = vmul.f32 1.442695, %v1374_v12  ;;  %v1363_v3 = vand.u32 2147483647, %v2694_v60  ;;  %v1649_v25 = vadd.f32 %v1648_v62, %v1647_v61 }
 0x34f   :  { %v1835_v23 = vpop.eup %1834  ;;  %v1407_v24 = vadd.f32 1.0, %v1833_v15 }
 0x350   :  { %v1451_v28 = vadd.f32 1e-06, %v1439_v17  ;;  %v1418_v22 = vmul.f32 0.6931472, %v1835_v23  ;;  %1844 = vpow2.f32 %v1393_v7  ;;  %v1375_v20 = vsub.f32 0.0, %v1363_v3  ;;  %v1650_v19 = vpop.f32.mrb[70].mxu0 }
 0x351   :  { %1846 = vlog2.f32 %v1407_v24  ;;  %v2703_v29 = vadd.f32 %v1649_v25, %v1206_v4  ;;  %v1651_v30 = vpop.f32.mrb[71].mxu0  ;;  %v1348_v7 = vmax.f32 %v2681_v21, 0.0 }
 0x352   :  { %v1837_v2 = vpop.eup %1836  ;;  %v1463_v54 = vadd.f32 1.0, %v1451_v28  ;;  %v1488_v26 = vmul.f32 %v2699_v63, %v1451_v28  ;;  %v1440_v59 = vadd.f32 %v1418_v22, %v1344_v14  ;;  %v1395_v58 = vmul.f32 1.442695, %v1375_v20 }
 0x353   :  { %v1839_v31 = vpop.eup %1838  ;;  %v1408_v10 = vadd.f32 1.0, %v1837_v2  ;;  %v1364_v55 = vand.u32 2147483647, %v2703_v29  ;;  %v1652_v32 = vadd.f32 %v1651_v30, %v1650_v19  ;;  %v1349_v19 = vmax.f32 %v2684_v40, 0.0 }
 0x354   :  { %1848 = vrcp.f32 %v1463_v54  ;;  %v1452_v33 = vadd.f32 1e-06, %v1440_v59  ;;  %v1420_v35 = vmul.f32 0.6931472, %v1839_v31  ;;  %v1653_v36 = vpop.f32.mrb[72].mxu0 }
 0x355   :  { %1850 = vlog2.f32 %v1408_v10  ;;  %v1376_v37 = vsub.f32 0.0, %v1364_v55  ;;  %v2708_v39 = vadd.f32 %v1652_v32, %v1211_v1  ;;  %v1654_v6 = vpop.f32.mrb[73].mxu0  ;;  %v1350_v55 = vmax.f32 %v2687_v47, 0.0 }
 0x356   :  { %v1841_v41 = vpop.eup %1840  ;;  %v2711_v38 = vmul.f32 %v2699_v63, %v1452_v33  ;;  %v1441_v45 = vadd.f32 %v1420_v35, %v1345_v34  ;;  %1852 = vpow2.f32 %v1395_v58  ;;  %v1655_v48 = vadd.f32 %v1654_v6, %v1653_v36 }
 0x357   :  { %v1843_v43 = vpop.eup %1842  ;;  %v1409_v5 = vadd.f32 1.0, %v1841_v41  ;;  %v1397_v44 = vmul.f32 1.442695, %v1376_v37  ;;  %v1365_v11 = vand.u32 2147483647, %v2708_v39  ;;  %v1464_v20 = vadd.f32 1.0, %v1452_v33 }
 0x358   :  { %v1453_v46 = vadd.f32 1e-06, %v1441_v45  ;;  %v1422_v9 = vmul.f32 0.6931472, %v1843_v43  ;;  %v2719_v42 = vadd.f32 %v1655_v48, %v1216_v8  ;;  %v1351_v43 = vmax.f32 %v2694_v60, 0.0 }
 0x359   :  { %1854 = vlog2.f32 %v1409_v5  ;;  %v1377_v49 = vsub.f32 0.0, %v1365_v11 }
 0x35a   :  { %v1845_v50 = vpop.eup %1844  ;;  %v2716_v51 = vmul.f32 %v2699_v63, %v1453_v46  ;;  %v1442_v52 = vadd.f32 %v1422_v9, %v1346_v18  ;;  %1856 = vpow2.f32 %v1397_v44  ;;  %v1366_v61 = vand.u32 2147483647, %v2719_v42 }
 0x35b   :  { %v1847_v53 = vpop.eup %1846  ;;  %v1410_v56 = vadd.f32 1.0, %v1845_v50  ;;  %v1399_v16 = vmul.f32 1.442695, %v1377_v49  ;;  %v1465_v34 = vadd.f32 1.0, %v1453_v46 }
 0x35c   :  { %v1454_v57 = vadd.f32 1e-06, %v1442_v52  ;;  %v1424_v12 = vmul.f32 0.6931472, %v1847_v53  ;;  %v1378_v14 = vsub.f32 0.0, %v1366_v61 }
 0x35d   :  { %1858 = vlog2.f32 %v1410_v56 }
 0x35e   :  { %v1849_v62 = vpop.eup %1848  ;;  %v2723_v15 = vmul.f32 %v2699_v63, %v1454_v57  ;;  %v1443_v0 = vadd.f32 %v1424_v12, %v1347_v13  ;;  %1860 = vpow2.f32 %v1399_v16  ;;  %v1466_v48 = vadd.f32 1.0, %v1454_v57 }
 0x35f   :  { %v1851_v4 = vpop.eup %1850  ;;  %v1490_v17 = vmul.f32 %v1849_v62, %v1488_v26  ;;  %v1401_v26 = vmul.f32 1.442695, %v1378_v14 }
 0x360   :  { %v1853_v3 = vpop.eup %1852  ;;  %v1455_v27 = vadd.f32 1e-06, %v1443_v0  ;;  %v1426_v23 = vmul.f32 0.6931472, %v1851_v4 }
 0x361   :  { %v1411_v24 = vadd.f32 1.0, %v1853_v3 }
 0x362   :  { %v2727_v25 = vmul.f32 %v2699_v63, %v1455_v27  ;;  %v1444_v28 = vadd.f32 %v1426_v23, %v1348_v7  ;;  %v1467_v61 = vadd.f32 1.0, %v1455_v27  ;;  %v1353_v7 = vmax.f32 %v2708_v39, 0.0 }
 0x363   :  { %v1855_v22 = vpop.eup %1854  ;;  %1862 = vlog2.f32 %v1411_v24 }
 0x364   :  { %v1857_v30 = vpop.eup %1856  ;;  %v1456_v2 = vadd.f32 1e-06, %v1444_v28  ;;  %v1428_v54 = vmul.f32 0.6931472, %v1855_v22  ;;  %1864 = vrcp.f32 %v1464_v20 }
 0x365   :  { %v1412_v21 = vadd.f32 1.0, %v1857_v30  ;;  %1866 = vpow2.f32 %v1401_v26  ;;  %v1354_v30 = vmax.f32 %v2719_v42, 0.0 }
 0x366   :  { %v2731_v59 = vmul.f32 %v2699_v63, %v1456_v2  ;;  %v1445_v58 = vadd.f32 %v1428_v54, %v1349_v19  ;;  %v1468_v24 = vadd.f32 1.0, %v1456_v2 }
 0x367   :  { %v1859_v31 = vpop.eup %1858  ;;  %1868 = vlog2.f32 %v1412_v21 }
 0x368   :  { %v1457_v10 = vadd.f32 1e-06, %v1445_v58  ;;  %v1430_v32 = vmul.f32 0.6931472, %v1859_v31  ;;  %v1861_v1 = vpop.eup %1860  ;;  %1870 = vrcp.f32 %v1465_v34 }
 0x369   :  { %v1413_v37 = vadd.f32 1.0, %v1861_v1 }
 0x36a   :  { %v1481_v40 = vmax.f32 %v1457_v10, 0.0  ;;  %v1446_v33 = vadd.f32 %v1430_v32, %v1350_v55 }
 0x36b   :  { %1872 = vlog2.f32 %v1413_v37 }
 0x36c   :  { %v1491_v35 = vsub.f32 %v1490_v17, %v1481_v40  ;;  %v1458_v41 = vadd.f32 1e-06, %v1446_v33  ;;  %1874 = vrcp.f32 %v1466_v48 }
 0x36d   :  { %v1863_v36 = vpop.eup %1862 }
 0x36e   :  { %v1492_v6 = vmax.f32 %v1491_v35, 0.0  ;;  %v1432_v63 = vmul.f32 0.6931472, %v1863_v36  ;;  %v1865_v5 = vpop.eup %1864  ;;  %v1482_v44 = vmax.f32 %v1458_v41, 0.0 }
 0x36f   :  { %v1867_v47 = vpop.eup %1866 }
 0x370   :  { %v1494_v45 = vadd.f32 %v2711_v38, %v1492_v6  ;;  %v1447_v18 = vadd.f32 %v1432_v63, %v1351_v43  ;;  %v1414_v49 = vadd.f32 1.0, %v1867_v47  ;;  %v1352_v38 = vmax.f32 %v2703_v29, 0.0 }
 0x371   :  { %v1869_v9 = vpop.eup %1868 }
 0x372   :  { %v1495_v11 = vmul.f32 %v1865_v5, %v1494_v45  ;;  %v1459_v8 = vadd.f32 1e-06, %v1447_v18  ;;  %v1434_v52 = vmul.f32 0.6931472, %v1869_v9  ;;  %v1871_v13 = vpop.eup %1870  ;;  %1876 = vlog2.f32 %v1414_v49 }
 0x373   :  { %1878 = vrcp.f32 %v1467_v61 }
 0x374   :  { %v1496_v46 = vsub.f32 %v1495_v11, %v1482_v44  ;;  %v1483_v60 = vmax.f32 %v1459_v8, 0.0  ;;  %v1448_v12 = vadd.f32 %v1434_v52, %v1352_v38  ;;  %1880 = vrcp.f32 %v1468_v24 }
 0x375   :  { %v1873_v16 = vpop.eup %1872 }
 0x376   :  { %v1497_v50 = vmax.f32 %v1496_v46, 0.0  ;;  %v1460_v57 = vadd.f32 1e-06, %v1448_v12  ;;  %v1436_v4 = vmul.f32 0.6931472, %v1873_v16  ;;  %v1875_v3 = vpop.eup %1874 }
 0x378   :  { %v1499_v53 = vadd.f32 %v2716_v51, %v1497_v50  ;;  %v1484_v51 = vmax.f32 %v1460_v57, 0.0  ;;  %v1449_v29 = vadd.f32 %v1436_v4, %v1353_v7 }
 0x37a   :  { %v1500_v56 = vmul.f32 %v1871_v13, %v1499_v53  ;;  %v1461_v20 = vadd.f32 1e-06, %v1449_v29 }
 0x37c   :  { %v1501_v62 = vsub.f32 %v1500_v56, %v1483_v60  ;;  %v1877_v14 = vpop.eup %1876  ;;  %v1485_v26 = vmax.f32 %v1461_v20, 0.0 }
 0x37d   :  { %v1438_v19 = vmul.f32 0.6931472, %v1877_v14  ;;  %v1879_v54 = vpop.eup %1878 }
 0x37e   :  { %v1502_v0 = vmax.f32 %v1501_v62, 0.0  ;;  %v1881_v55 = vpop.eup %1880 }
 0x37f   :  { %v1450_v21 = vadd.f32 %v1438_v19, %v1354_v30 }
 0x380   :  { %v1504_v17 = vadd.f32 %v2723_v15, %v1502_v0 }
 0x381   :  { %v1462_v31 = vadd.f32 1e-06, %v1450_v21 }
 0x382   :  { %v1505_v23 = vmul.f32 %v1875_v3, %v1504_v17 }
 0x383   :  { %v1486_v2 = vmax.f32 %v1462_v31, 0.0 }
 0x384   :  { %v1506_v28 = vsub.f32 %v1505_v23, %v1484_v51 }
 0x386   :  { %v1507_v22 = vmax.f32 %v1506_v28, 0.0 }
 0x388   :  { %v1509_v27 = vadd.f32 %v2727_v25, %v1507_v22 }
 0x38a   :  { %v1510_v15 = vmul.f32 %v1879_v54, %v1509_v27 }
 0x38c   :  { %v1511_v39 = vsub.f32 %v1510_v15, %v1485_v26 }
 0x38e   :  { %v1512_v58 = vmax.f32 %v1511_v39, 0.0 }
 0x390   :  { %v1514_v10 = vadd.f32 %v2731_v59, %v1512_v58 }
 0x392   :  { %v1515_v32 = vmul.f32 %v1881_v55, %v1514_v10 }
 0x394   :  { %v1516_v1 = vsub.f32 %v1515_v32, %v1486_v2 }
 0x396   :  { %v1517_v40 = vmax.f32 %v1516_v1, 0.0 }
 0x398   :  { %1518 = vst [vmem:[%s2754_s8] sm:$0xff] %v1517_v40 }

</bundles_post_ra>
